<compile_context>
chip_gen: v7x
topology: tpu7x:2x2x1
jax: 0.10.0
libtpu: 0.0.40
codegen_flags: <defaults>
</compile_context>

<pallas_src>
import jax
import jax.numpy as jnp
from jax.experimental import pallas as pl
from jax.experimental.pallas import tpu as pltpu


NEG_BIAS = -1e30            # finite -inf stand-in; exp() underflows to exactly 0 in f32
VMEM_CAP_BYTES = 52 << 20   # below v7x's 64 MiB physical VMEM; fine on v5e/v6e 128 MiB parts


def _round_up(n, m=128):
    return ((n + m - 1) // m) * m


def _disc_kernel(x_ref,
                 w1_ref, b1_ref, w2_ref, b2_ref, w3_ref, b3_ref,
                 w4_ref, b4_ref, w5_ref, b5_ref,
                 out_ref):
    """5x (bf16 MXU matmul, f32 accumulate, f32 bias), LeakyReLU(0.2), softmax over features."""

    def lin(h, w_ref, b_ref):
        acc = jnp.dot(h, w_ref[...], preferred_element_type=jnp.float32)
        return acc + b_ref[...]

    def act(h):  # LeakyReLU(0.2) in f32
        return jnp.where(h > 0, h, 0.2 * h)

    h = x_ref[...]                                            # bf16 [tile_b, d_pad]
    h = act(lin(h, w1_ref, b1_ref)).astype(jnp.bfloat16)      # D     -> D/4   (padded)
    h = act(lin(h, w2_ref, b2_ref)).astype(jnp.bfloat16)      # D/4   -> D/8   (padded)
    h = act(lin(h, w3_ref, b3_ref)).astype(jnp.bfloat16)      # D/8   -> D/16  (padded)
    h = act(lin(h, w4_ref, b4_ref)).astype(jnp.bfloat16)      # D/16  -> D     (padded)
    s = lin(h, w5_ref, b5_ref)                                # f32 [tile_b, out_pad]
    # padded output columns already carry a -1e30 bias -> exp() == 0, no in-kernel mask needed

    # numerically-stable softmax over the feature axis; exact per-row reciprocal
    m = jnp.max(s, axis=1, keepdims=True)
    e = jnp.exp(s - m)
    denom = jnp.sum(e, axis=1, keepdims=True)
    inv = 1.0 / denom                                         # exact, only tile_b scalars
    out_ref[...] = (e * inv).astype(out_ref.dtype)


def prepare_discriminator_params(params, input_dim):
    """One-time prep (call at init, NOT per forward): pad every layer width to a multiple of
    128, cast weights to bf16, keep biases f32, and fold the padded-lane softmax mask into the
    last bias (-1e30 in padded output columns)."""
    dims = [input_dim, input_dim // 4, input_dim // 8, input_dim // 16, input_dim, input_dim]
    pdims = [_round_up(d) for d in dims]

    flat = []
    for li, (w, b) in enumerate(params):
        d_in, d_out = dims[li], dims[li + 1]
        p_in, p_out = pdims[li], pdims[li + 1]
        w_p = jnp.zeros((p_in, p_out), jnp.float32).at[:d_in, :d_out].set(w)
        if li == len(params) - 1:
            b_base = jnp.full((1, p_out), NEG_BIAS, jnp.float32)   # mask padded score lanes
        else:
            b_base = jnp.zeros((1, p_out), jnp.float32)
        b_p = b_base.at[:, :d_out].set(b)
        flat += [w_p.astype(jnp.bfloat16), b_p]

    return {"flat": tuple(flat), "dims": tuple(dims), "pdims": tuple(pdims),
            "input_dim": input_dim}


def _pick_tile_b(B, d_pad, weight_bytes):
    """Largest multiple-of-8 divisor of B, capped so (weights + tiles + temps) fit VMEM and so
    the grid has >= 2 steps for B >= 16 (lets ('parallel',) shard across v7x's two TCs)."""
    cap = 512

    def tiles_bytes(t):
        # x tile (bf16, x2 buffers) + out tile (f32, x2 buffers) + ~3 f32 temporaries (s, e, acc)
        return 2 * t * d_pad * 2 + 2 * t * d_pad * 4 + 3 * t * d_pad * 4

    while cap > 8 and weight_bytes + tiles_bytes(cap) > (48 << 20):
        cap //= 2

    if B <= 8:
        return B
    t = min(cap, (B // 2) // 8 * 8)        # // 2 -> at least 2 grid steps when possible
    while t >= 8:
        if B % t == 0:
            return t
        t -= 8
    return B                               # no multiple-of-8 divisor: single full-B step


def discriminator_forward(x, prep, *, tile_b=None, out_dtype=jnp.float32):
    """x: [B, D] float32 (or bf16). prep: output of prepare_discriminator_params."""
    B, D = x.shape
    assert D == prep["input_dim"], "input feature dim mismatch"
    d_pad = prep["pdims"][0]
    out_pad = prep["pdims"][-1]
    flat = prep["flat"]

    weight_bytes = sum(a.size * a.dtype.itemsize for a in flat)
    if tile_b is None:
        tile_b = _pick_tile_b(B, max(d_pad, out_pad), weight_bytes)
    assert B % tile_b == 0
    grid = (B // tile_b,)

    # per-call input prep: only pad/cast the activations (weights were prepped once)
    x_p = x if D == d_pad else jnp.pad(x, ((0, 0), (0, d_pad - D)))
    x_p = x_p.astype(jnp.bfloat16)

    # VMEM budget: weights (2x to stay safe if single-buffering is unavailable),
    # double-buffered x/out tiles, plus f32 in-kernel temporaries; capped below v7x physical.
    out_itemsize = jnp.dtype(out_dtype).itemsize
    needed = 2 * weight_bytes
    needed += 2 * tile_b * d_pad * 2                 # x tile, bf16, x2 buffers
    needed += 2 * tile_b * out_pad * out_itemsize    # out tile, x2 buffers
    needed += 3 * tile_b * out_pad * 4               # f32 temporaries (s, e, acc)
    vmem_limit = int(min(VMEM_CAP_BYTES, max(16 << 20, int(needed * 1.5))))

    x_spec = pl.BlockSpec((tile_b, d_pad), lambda i: (i, 0))
    out_spec = pl.BlockSpec((tile_b, out_pad), lambda i: (i, 0))

    def build(single_buffer_weights):
        if single_buffer_weights:
            kwargs = {"pipeline_mode": pl.Buffered(1)}   # constant index_map -> resident once
        else:
            kwargs = {}
        p_specs = [pl.BlockSpec(a.shape, lambda i: (0, 0), **kwargs) for a in flat]
        return pl.pallas_call(
            _disc_kernel,
            out_shape=jax.ShapeDtypeStruct((B, out_pad), out_dtype),
            grid=grid,
            in_specs=[x_spec] + p_specs,
            out_specs=out_spec,
            compiler_params=pltpu.CompilerParams(
                dimension_semantics=("parallel",),
                vmem_limit_bytes=vmem_limit,
            ),
        )

    try:
        out_padded = build(True)(x_p, *flat)
    except Exception:
        # older JAX / interpreters without BlockSpec pipeline_mode support: default buffering
        out_padded = build(False)(x_p, *flat)

    return out_padded if out_pad == D else out_padded[:, :D]


def init_params(key, input_dim):
    """Deterministic init matching the nn.Sequential layer shapes (W: [in, out], b: [1, out])."""
    dims = [input_dim, input_dim // 4, input_dim // 8, input_dim // 16, input_dim, input_dim]
    params = []
    for li in range(5):
        d_in, d_out = dims[li], dims[li + 1]
        key, kw, kb = jax.random.split(key, 3)
        scale = 1.0 / jnp.sqrt(jnp.float32(d_in))
        w = jax.random.uniform(kw, (d_in, d_out), jnp.float32, -scale, scale)
        b = jax.random.uniform(kb, (1, d_out), jnp.float32, -scale, scale)
        params.append((w, b))
    return params


def reference_forward(x, params):
    """Pure-f32 reference of the PyTorch module."""
    h = x
    for li, (w, b) in enumerate(params):
        h = h @ w + b
        if li < 4:
            h = jnp.where(h > 0, h, 0.2 * h)
    return jax.nn.softmax(h, axis=1)


if __name__ == "__main__":
    key = jax.random.PRNGKey(0)
    B, D = 16, 64  # input_dim=64 -> hidden widths 16, 8, 4

    kx, kp = jax.random.split(key)
    x = jax.random.normal(kx, (B, D), dtype=jnp.float32)
    params = init_params(kp, D)

    prep = prepare_discriminator_params(params, D)   # one-time: pad + bf16 cast, off hot path
    out = discriminator_forward(x, prep)
    out = jax.block_until_ready(out)

    ref = reference_forward(x, params)
    assert out.shape == (B, D)
    # bf16 matmul operands/intermediates -> relaxed tolerance vs the f32 reference
    assert jnp.allclose(out, ref, atol=5e-3, rtol=5e-2), "mismatch vs reference"
    # softmax rows sum to 1 (exact normalization; padded lanes contribute exactly 0)
    assert jnp.allclose(jnp.sum(out, axis=1), jnp.ones((B,)), atol=2e-3)

    print("KERNEL_OK")
</pallas_src>

<mosaic_0001>
module attributes {stable_mosaic.version = 11 : i64} {
  func.func @_disc_kernel(%arg0: i32, %arg1: memref<8x128xbf16, #tpu.memory_space<vmem>>, %arg2: memref<128x128xbf16, #tpu.memory_space<vmem>>, %arg3: memref<1x128xf32, #tpu.memory_space<vmem>>, %arg4: memref<128x128xbf16, #tpu.memory_space<vmem>>, %arg5: memref<1x128xf32, #tpu.memory_space<vmem>>, %arg6: memref<128x128xbf16, #tpu.memory_space<vmem>>, %arg7: memref<1x128xf32, #tpu.memory_space<vmem>>, %arg8: memref<128x128xbf16, #tpu.memory_space<vmem>>, %arg9: memref<1x128xf32, #tpu.memory_space<vmem>>, %arg10: memref<128x128xbf16, #tpu.memory_space<vmem>>, %arg11: memref<1x128xf32, #tpu.memory_space<vmem>>, %arg12: memref<8x128xf32, #tpu.memory_space<vmem>>) attributes {dimension_semantics = [#tpu.dimension_semantics<parallel>], iteration_bounds = array<i64: 2>, scalar_prefetch = 0 : i64, scratch_operands = 0 : i64, tpu.core_type = #tpu.core_type<tc>, window_params = [{transform_indices = @transform_0, window_bounds = array<i64: 8, 128>}, {pipeline_mode = #tpu.pipeline_mode<synchronous>, transform_indices = @transform_1, window_bounds = array<i64: 128, 128>}, {pipeline_mode = #tpu.pipeline_mode<synchronous>, transform_indices = @transform_2, window_bounds = array<i64: 1, 128>}, {pipeline_mode = #tpu.pipeline_mode<synchronous>, transform_indices = @transform_3, window_bounds = array<i64: 128, 128>}, {pipeline_mode = #tpu.pipeline_mode<synchronous>, transform_indices = @transform_4, window_bounds = array<i64: 1, 128>}, {pipeline_mode = #tpu.pipeline_mode<synchronous>, transform_indices = @transform_5, window_bounds = array<i64: 128, 128>}, {pipeline_mode = #tpu.pipeline_mode<synchronous>, transform_indices = @transform_6, window_bounds = array<i64: 1, 128>}, {pipeline_mode = #tpu.pipeline_mode<synchronous>, transform_indices = @transform_7, window_bounds = array<i64: 128, 128>}, {pipeline_mode = #tpu.pipeline_mode<synchronous>, transform_indices = @transform_8, window_bounds = array<i64: 1, 128>}, {pipeline_mode = #tpu.pipeline_mode<synchronous>, transform_indices = @transform_9, window_bounds = array<i64: 128, 128>}, {pipeline_mode = #tpu.pipeline_mode<synchronous>, transform_indices = @transform_10, window_bounds = array<i64: 1, 128>}, {transform_indices = @transform_11, window_bounds = array<i64: 8, 128>}]} {
    %c0 = arith.constant 0 : index
    %c0_0 = arith.constant 0 : index
    %0 = vector.load %arg1[%c0, %c0_0] : memref<8x128xbf16, #tpu.memory_space<vmem>>, vector<8x128xbf16>
    %c0_1 = arith.constant 0 : index
    %c0_2 = arith.constant 0 : index
    %1 = vector.load %arg2[%c0_1, %c0_2] : memref<128x128xbf16, #tpu.memory_space<vmem>>, vector<128x128xbf16>
    %cst = arith.constant dense<0.000000e+00> : vector<8x128xf32>
    %2 = tpu.matmul %0, %1, %cst {dimension_numbers = #tpu.dot_dimension_numbers<[1], [0], [0], [1], [0, 0, 1, 1], [], []>} : vector<8x128xbf16>, vector<128x128xbf16>, vector<8x128xf32> -> vector<8x128xf32>
    %c0_3 = arith.constant 0 : index
    %c0_4 = arith.constant 0 : index
    %3 = vector.load %arg3[%c0_3, %c0_4] : memref<1x128xf32, #tpu.memory_space<vmem>>, vector<1x128xf32>
    %4 = vector.broadcast %3 : vector<1x128xf32> to vector<8x128xf32>
    %5 = arith.addf %2, %4 : vector<8x128xf32>
    %cst_5 = arith.constant 0.000000e+00 : f32
    %6 = vector.broadcast %cst_5 : f32 to vector<8x128xf32>
    %7 = arith.cmpf ogt, %5, %6 : vector<8x128xf32>
    %cst_6 = arith.constant 2.000000e-01 : f32
    %8 = vector.broadcast %cst_6 : f32 to vector<8x128xf32>
    %9 = arith.mulf %8, %5 : vector<8x128xf32>
    %10 = arith.select %7, %5, %9 : vector<8x128xi1>, vector<8x128xf32>
    %11 = arith.truncf %10 : vector<8x128xf32> to vector<8x128xbf16>
    %c0_7 = arith.constant 0 : index
    %c0_8 = arith.constant 0 : index
    %12 = vector.load %arg4[%c0_7, %c0_8] : memref<128x128xbf16, #tpu.memory_space<vmem>>, vector<128x128xbf16>
    %cst_9 = arith.constant dense<0.000000e+00> : vector<8x128xf32>
    %13 = tpu.matmul %11, %12, %cst_9 {dimension_numbers = #tpu.dot_dimension_numbers<[1], [0], [0], [1], [0, 0, 1, 1], [], []>} : vector<8x128xbf16>, vector<128x128xbf16>, vector<8x128xf32> -> vector<8x128xf32>
    %c0_10 = arith.constant 0 : index
    %c0_11 = arith.constant 0 : index
    %14 = vector.load %arg5[%c0_10, %c0_11] : memref<1x128xf32, #tpu.memory_space<vmem>>, vector<1x128xf32>
    %15 = vector.broadcast %14 : vector<1x128xf32> to vector<8x128xf32>
    %16 = arith.addf %13, %15 : vector<8x128xf32>
    %cst_12 = arith.constant 0.000000e+00 : f32
    %17 = vector.broadcast %cst_12 : f32 to vector<8x128xf32>
    %18 = arith.cmpf ogt, %16, %17 : vector<8x128xf32>
    %cst_13 = arith.constant 2.000000e-01 : f32
    %19 = vector.broadcast %cst_13 : f32 to vector<8x128xf32>
    %20 = arith.mulf %19, %16 : vector<8x128xf32>
    %21 = arith.select %18, %16, %20 : vector<8x128xi1>, vector<8x128xf32>
    %22 = arith.truncf %21 : vector<8x128xf32> to vector<8x128xbf16>
    %c0_14 = arith.constant 0 : index
    %c0_15 = arith.constant 0 : index
    %23 = vector.load %arg6[%c0_14, %c0_15] : memref<128x128xbf16, #tpu.memory_space<vmem>>, vector<128x128xbf16>
    %cst_16 = arith.constant dense<0.000000e+00> : vector<8x128xf32>
    %24 = tpu.matmul %22, %23, %cst_16 {dimension_numbers = #tpu.dot_dimension_numbers<[1], [0], [0], [1], [0, 0, 1, 1], [], []>} : vector<8x128xbf16>, vector<128x128xbf16>, vector<8x128xf32> -> vector<8x128xf32>
    %c0_17 = arith.constant 0 : index
    %c0_18 = arith.constant 0 : index
    %25 = vector.load %arg7[%c0_17, %c0_18] : memref<1x128xf32, #tpu.memory_space<vmem>>, vector<1x128xf32>
    %26 = vector.broadcast %25 : vector<1x128xf32> to vector<8x128xf32>
    %27 = arith.addf %24, %26 : vector<8x128xf32>
    %cst_19 = arith.constant 0.000000e+00 : f32
    %28 = vector.broadcast %cst_19 : f32 to vector<8x128xf32>
    %29 = arith.cmpf ogt, %27, %28 : vector<8x128xf32>
    %cst_20 = arith.constant 2.000000e-01 : f32
    %30 = vector.broadcast %cst_20 : f32 to vector<8x128xf32>
    %31 = arith.mulf %30, %27 : vector<8x128xf32>
    %32 = arith.select %29, %27, %31 : vector<8x128xi1>, vector<8x128xf32>
    %33 = arith.truncf %32 : vector<8x128xf32> to vector<8x128xbf16>
    %c0_21 = arith.constant 0 : index
    %c0_22 = arith.constant 0 : index
    %34 = vector.load %arg8[%c0_21, %c0_22] : memref<128x128xbf16, #tpu.memory_space<vmem>>, vector<128x128xbf16>
    %cst_23 = arith.constant dense<0.000000e+00> : vector<8x128xf32>
    %35 = tpu.matmul %33, %34, %cst_23 {dimension_numbers = #tpu.dot_dimension_numbers<[1], [0], [0], [1], [0, 0, 1, 1], [], []>} : vector<8x128xbf16>, vector<128x128xbf16>, vector<8x128xf32> -> vector<8x128xf32>
    %c0_24 = arith.constant 0 : index
    %c0_25 = arith.constant 0 : index
    %36 = vector.load %arg9[%c0_24, %c0_25] : memref<1x128xf32, #tpu.memory_space<vmem>>, vector<1x128xf32>
    %37 = vector.broadcast %36 : vector<1x128xf32> to vector<8x128xf32>
    %38 = arith.addf %35, %37 : vector<8x128xf32>
    %cst_26 = arith.constant 0.000000e+00 : f32
    %39 = vector.broadcast %cst_26 : f32 to vector<8x128xf32>
    %40 = arith.cmpf ogt, %38, %39 : vector<8x128xf32>
    %cst_27 = arith.constant 2.000000e-01 : f32
    %41 = vector.broadcast %cst_27 : f32 to vector<8x128xf32>
    %42 = arith.mulf %41, %38 : vector<8x128xf32>
    %43 = arith.select %40, %38, %42 : vector<8x128xi1>, vector<8x128xf32>
    %44 = arith.truncf %43 : vector<8x128xf32> to vector<8x128xbf16>
    %c0_28 = arith.constant 0 : index
    %c0_29 = arith.constant 0 : index
    %45 = vector.load %arg10[%c0_28, %c0_29] : memref<128x128xbf16, #tpu.memory_space<vmem>>, vector<128x128xbf16>
    %cst_30 = arith.constant dense<0.000000e+00> : vector<8x128xf32>
    %46 = tpu.matmul %44, %45, %cst_30 {dimension_numbers = #tpu.dot_dimension_numbers<[1], [0], [0], [1], [0, 0, 1, 1], [], []>} : vector<8x128xbf16>, vector<128x128xbf16>, vector<8x128xf32> -> vector<8x128xf32>
    %c0_31 = arith.constant 0 : index
    %c0_32 = arith.constant 0 : index
    %47 = vector.load %arg11[%c0_31, %c0_32] : memref<1x128xf32, #tpu.memory_space<vmem>>, vector<1x128xf32>
    %48 = vector.broadcast %47 : vector<1x128xf32> to vector<8x128xf32>
    %49 = arith.addf %46, %48 : vector<8x128xf32>
    %cst_33 = arith.constant dense<0xFF800000> : vector<8xf32>
    %50 = vector.multi_reduction <maximumf>, %49, %cst_33 [1] : vector<8x128xf32> to vector<8xf32>
    %51 = vector.shape_cast %50 : vector<8xf32> to vector<8x1xf32>
    %52 = vector.broadcast %51 : vector<8x1xf32> to vector<8x128xf32>
    %53 = arith.subf %49, %52 : vector<8x128xf32>
    %54 = math.exp %53 : vector<8x128xf32>
    %cst_34 = arith.constant dense<0.000000e+00> : vector<8xf32>
    %55 = vector.multi_reduction <add>, %54, %cst_34 [1] : vector<8x128xf32> to vector<8xf32>
    %56 = vector.shape_cast %55 : vector<8xf32> to vector<8x1xf32>
    %cst_35 = arith.constant 1.000000e+00 : f32
    %57 = vector.broadcast %cst_35 : f32 to vector<8x1xf32>
    %58 = arith.divf %57, %56 : vector<8x1xf32>
    %59 = vector.broadcast %58 : vector<8x1xf32> to vector<8x128xf32>
    %60 = arith.mulf %54, %59 : vector<8x128xf32>
    %c0_36 = arith.constant 0 : index
    %c0_37 = arith.constant 0 : index
    %61 = vector.load %arg12[%c0_36, %c0_37] : memref<8x128xf32, #tpu.memory_space<vmem>>, vector<8x128xf32>
    tpu.vector_store %arg12[%c0_36, %c0_37], %60 {strides = array<i32>} : memref<8x128xf32, #tpu.memory_space<vmem>>, vector<8x128xf32>,
    return
  }
  func.func @transform_0(%arg0: i32) -> (i32, i32) {
    %c0_i32 = arith.constant 0 : i32
    %c0_i32_0 = arith.constant 0 : i32
    return %arg0, %c0_i32 : i32, i32
  }
  func.func @transform_1(%arg0: i32) -> (i32, i32) {
    %c0_i32 = arith.constant 0 : i32
    %c0_i32_0 = arith.constant 0 : i32
    %c0_i32_1 = arith.constant 0 : i32
    return %c0_i32, %c0_i32_0 : i32, i32
  }
  func.func @transform_2(%arg0: i32) -> (i32, i32) {
    %c0_i32 = arith.constant 0 : i32
    %c0_i32_0 = arith.constant 0 : i32
    %c0_i32_1 = arith.constant 0 : i32
    return %c0_i32, %c0_i32_0 : i32, i32
  }
  func.func @transform_3(%arg0: i32) -> (i32, i32) {
    %c0_i32 = arith.constant 0 : i32
    %c0_i32_0 = arith.constant 0 : i32
    %c0_i32_1 = arith.constant 0 : i32
    return %c0_i32, %c0_i32_0 : i32, i32
  }
  func.func @transform_4(%arg0: i32) -> (i32, i32) {
    %c0_i32 = arith.constant 0 : i32
    %c0_i32_0 = arith.constant 0 : i32
    %c0_i32_1 = arith.constant 0 : i32
    return %c0_i32, %c0_i32_0 : i32, i32
  }
  func.func @transform_5(%arg0: i32) -> (i32, i32) {
    %c0_i32 = arith.constant 0 : i32
    %c0_i32_0 = arith.constant 0 : i32
    %c0_i32_1 = arith.constant 0 : i32
    return %c0_i32, %c0_i32_0 : i32, i32
  }
  func.func @transform_6(%arg0: i32) -> (i32, i32) {
    %c0_i32 = arith.constant 0 : i32
    %c0_i32_0 = arith.constant 0 : i32
    %c0_i32_1 = arith.constant 0 : i32
    return %c0_i32, %c0_i32_0 : i32, i32
  }
  func.func @transform_7(%arg0: i32) -> (i32, i32) {
    %c0_i32 = arith.constant 0 : i32
    %c0_i32_0 = arith.constant 0 : i32
    %c0_i32_1 = arith.constant 0 : i32
    return %c0_i32, %c0_i32_0 : i32, i32
  }
  func.func @transform_8(%arg0: i32) -> (i32, i32) {
    %c0_i32 = arith.constant 0 : i32
    %c0_i32_0 = arith.constant 0 : i32
    %c0_i32_1 = arith.constant 0 : i32
    return %c0_i32, %c0_i32_0 : i32, i32
  }
  func.func @transform_9(%arg0: i32) -> (i32, i32) {
    %c0_i32 = arith.constant 0 : i32
    %c0_i32_0 = arith.constant 0 : i32
    %c0_i32_1 = arith.constant 0 : i32
    return %c0_i32, %c0_i32_0 : i32, i32
  }
  func.func @transform_10(%arg0: i32) -> (i32, i32) {
    %c0_i32 = arith.constant 0 : i32
    %c0_i32_0 = arith.constant 0 : i32
    %c0_i32_1 = arith.constant 0 : i32
    return %c0_i32, %c0_i32_0 : i32, i32
  }
  func.func @transform_11(%arg0: i32) -> (i32, i32) {
    %c0_i32 = arith.constant 0 : i32
    %c0_i32_0 = arith.constant 0 : i32
    return %arg0, %c0_i32 : i32, i32
  }
}

module attributes {stable_mosaic.version = 11 : i64} {
  func.func @_disc_kernel(%arg0: i32, %arg1: memref<8x128xbf16, #tpu.memory_space<vmem>>, %arg2: memref<128x128xbf16, #tpu.memory_space<vmem>>, %arg3: memref<1x128xf32, #tpu.memory_space<vmem>>, %arg4: memref<128x128xbf16, #tpu.memory_space<vmem>>, %arg5: memref<1x128xf32, #tpu.memory_space<vmem>>, %arg6: memref<128x128xbf16, #tpu.memory_space<vmem>>, %arg7: memref<1x128xf32, #tpu.memory_space<vmem>>, %arg8: memref<128x128xbf16, #tpu.memory_space<vmem>>, %arg9: memref<1x128xf32, #tpu.memory_space<vmem>>, %arg10: memref<128x128xbf16, #tpu.memory_space<vmem>>, %arg11: memref<1x128xf32, #tpu.memory_space<vmem>>, %arg12: memref<8x128xf32, #tpu.memory_space<vmem>>) attributes {dimension_semantics = [#tpu.dimension_semantics<parallel>], iteration_bounds = array<i64: 2>, scalar_prefetch = 0 : i64, scratch_operands = 0 : i64, tpu.core_type = #tpu.core_type<tc>, window_params = [{transform_indices = @transform_0, window_bounds = array<i64: 8, 128>}, {pipeline_mode = #tpu.pipeline_mode<synchronous>, transform_indices = @transform_1, window_bounds = array<i64: 128, 128>}, {pipeline_mode = #tpu.pipeline_mode<synchronous>, transform_indices = @transform_2, window_bounds = array<i64: 1, 128>}, {pipeline_mode = #tpu.pipeline_mode<synchronous>, transform_indices = @transform_3, window_bounds = array<i64: 128, 128>}, {pipeline_mode = #tpu.pipeline_mode<synchronous>, transform_indices = @transform_4, window_bounds = array<i64: 1, 128>}, {pipeline_mode = #tpu.pipeline_mode<synchronous>, transform_indices = @transform_5, window_bounds = array<i64: 128, 128>}, {pipeline_mode = #tpu.pipeline_mode<synchronous>, transform_indices = @transform_6, window_bounds = array<i64: 1, 128>}, {pipeline_mode = #tpu.pipeline_mode<synchronous>, transform_indices = @transform_7, window_bounds = array<i64: 128, 128>}, {pipeline_mode = #tpu.pipeline_mode<synchronous>, transform_indices = @transform_8, window_bounds = array<i64: 1, 128>}, {pipeline_mode = #tpu.pipeline_mode<synchronous>, transform_indices = @transform_9, window_bounds = array<i64: 128, 128>}, {pipeline_mode = #tpu.pipeline_mode<synchronous>, transform_indices = @transform_10, window_bounds = array<i64: 1, 128>}, {transform_indices = @transform_11, window_bounds = array<i64: 8, 128>}]} {
    %c0 = arith.constant 0 : index
    %c0_0 = arith.constant 0 : index
    %0 = vector.load %arg1[%c0, %c0_0] : memref<8x128xbf16, #tpu.memory_space<vmem>>, vector<8x128xbf16>
    %c0_1 = arith.constant 0 : index
    %c0_2 = arith.constant 0 : index
    %1 = vector.load %arg2[%c0_1, %c0_2] : memref<128x128xbf16, #tpu.memory_space<vmem>>, vector<128x128xbf16>
    %cst = arith.constant dense<0.000000e+00> : vector<8x128xf32>
    %2 = tpu.matmul %0, %1, %cst {dimension_numbers = #tpu.dot_dimension_numbers<[1], [0], [0], [1], [0, 0, 1, 1], [], []>} : vector<8x128xbf16>, vector<128x128xbf16>, vector<8x128xf32> -> vector<8x128xf32>
    %c0_3 = arith.constant 0 : index
    %c0_4 = arith.constant 0 : index
    %3 = vector.load %arg3[%c0_3, %c0_4] : memref<1x128xf32, #tpu.memory_space<vmem>>, vector<1x128xf32>
    %4 = vector.broadcast %3 : vector<1x128xf32> to vector<8x128xf32>
    %5 = arith.addf %2, %4 : vector<8x128xf32>
    %cst_5 = arith.constant 0.000000e+00 : f32
    %6 = vector.broadcast %cst_5 : f32 to vector<8x128xf32>
    %7 = arith.cmpf ogt, %5, %6 : vector<8x128xf32>
    %cst_6 = arith.constant 2.000000e-01 : f32
    %8 = vector.broadcast %cst_6 : f32 to vector<8x128xf32>
    %9 = arith.mulf %8, %5 : vector<8x128xf32>
    %10 = arith.select %7, %5, %9 : vector<8x128xi1>, vector<8x128xf32>
    %11 = arith.truncf %10 : vector<8x128xf32> to vector<8x128xbf16>
    %c0_7 = arith.constant 0 : index
    %c0_8 = arith.constant 0 : index
    %12 = vector.load %arg4[%c0_7, %c0_8] : memref<128x128xbf16, #tpu.memory_space<vmem>>, vector<128x128xbf16>
    %cst_9 = arith.constant dense<0.000000e+00> : vector<8x128xf32>
    %13 = tpu.matmul %11, %12, %cst_9 {dimension_numbers = #tpu.dot_dimension_numbers<[1], [0], [0], [1], [0, 0, 1, 1], [], []>} : vector<8x128xbf16>, vector<128x128xbf16>, vector<8x128xf32> -> vector<8x128xf32>
    %c0_10 = arith.constant 0 : index
    %c0_11 = arith.constant 0 : index
    %14 = vector.load %arg5[%c0_10, %c0_11] : memref<1x128xf32, #tpu.memory_space<vmem>>, vector<1x128xf32>
    %15 = vector.broadcast %14 : vector<1x128xf32> to vector<8x128xf32>
    %16 = arith.addf %13, %15 : vector<8x128xf32>
    %cst_12 = arith.constant 0.000000e+00 : f32
    %17 = vector.broadcast %cst_12 : f32 to vector<8x128xf32>
    %18 = arith.cmpf ogt, %16, %17 : vector<8x128xf32>
    %cst_13 = arith.constant 2.000000e-01 : f32
    %19 = vector.broadcast %cst_13 : f32 to vector<8x128xf32>
    %20 = arith.mulf %19, %16 : vector<8x128xf32>
    %21 = arith.select %18, %16, %20 : vector<8x128xi1>, vector<8x128xf32>
    %22 = arith.truncf %21 : vector<8x128xf32> to vector<8x128xbf16>
    %c0_14 = arith.constant 0 : index
    %c0_15 = arith.constant 0 : index
    %23 = vector.load %arg6[%c0_14, %c0_15] : memref<128x128xbf16, #tpu.memory_space<vmem>>, vector<128x128xbf16>
    %cst_16 = arith.constant dense<0.000000e+00> : vector<8x128xf32>
    %24 = tpu.matmul %22, %23, %cst_16 {dimension_numbers = #tpu.dot_dimension_numbers<[1], [0], [0], [1], [0, 0, 1, 1], [], []>} : vector<8x128xbf16>, vector<128x128xbf16>, vector<8x128xf32> -> vector<8x128xf32>
    %c0_17 = arith.constant 0 : index
    %c0_18 = arith.constant 0 : index
    %25 = vector.load %arg7[%c0_17, %c0_18] : memref<1x128xf32, #tpu.memory_space<vmem>>, vector<1x128xf32>
    %26 = vector.broadcast %25 : vector<1x128xf32> to vector<8x128xf32>
    %27 = arith.addf %24, %26 : vector<8x128xf32>
    %cst_19 = arith.constant 0.000000e+00 : f32
    %28 = vector.broadcast %cst_19 : f32 to vector<8x128xf32>
    %29 = arith.cmpf ogt, %27, %28 : vector<8x128xf32>
    %cst_20 = arith.constant 2.000000e-01 : f32
    %30 = vector.broadcast %cst_20 : f32 to vector<8x128xf32>
    %31 = arith.mulf %30, %27 : vector<8x128xf32>
    %32 = arith.select %29, %27, %31 : vector<8x128xi1>, vector<8x128xf32>
    %33 = arith.truncf %32 : vector<8x128xf32> to vector<8x128xbf16>
    %c0_21 = arith.constant 0 : index
    %c0_22 = arith.constant 0 : index
    %34 = vector.load %arg8[%c0_21, %c0_22] : memref<128x128xbf16, #tpu.memory_space<vmem>>, vector<128x128xbf16>
    %cst_23 = arith.constant dense<0.000000e+00> : vector<8x128xf32>
    %35 = tpu.matmul %33, %34, %cst_23 {dimension_numbers = #tpu.dot_dimension_numbers<[1], [0], [0], [1], [0, 0, 1, 1], [], []>} : vector<8x128xbf16>, vector<128x128xbf16>, vector<8x128xf32> -> vector<8x128xf32>
    %c0_24 = arith.constant 0 : index
    %c0_25 = arith.constant 0 : index
    %36 = vector.load %arg9[%c0_24, %c0_25] : memref<1x128xf32, #tpu.memory_space<vmem>>, vector<1x128xf32>
    %37 = vector.broadcast %36 : vector<1x128xf32> to vector<8x128xf32>
    %38 = arith.addf %35, %37 : vector<8x128xf32>
    %cst_26 = arith.constant 0.000000e+00 : f32
    %39 = vector.broadcast %cst_26 : f32 to vector<8x128xf32>
    %40 = arith.cmpf ogt, %38, %39 : vector<8x128xf32>
    %cst_27 = arith.constant 2.000000e-01 : f32
    %41 = vector.broadcast %cst_27 : f32 to vector<8x128xf32>
    %42 = arith.mulf %41, %38 : vector<8x128xf32>
    %43 = arith.select %40, %38, %42 : vector<8x128xi1>, vector<8x128xf32>
    %44 = arith.truncf %43 : vector<8x128xf32> to vector<8x128xbf16>
    %c0_28 = arith.constant 0 : index
    %c0_29 = arith.constant 0 : index
    %45 = vector.load %arg10[%c0_28, %c0_29] : memref<128x128xbf16, #tpu.memory_space<vmem>>, vector<128x128xbf16>
    %cst_30 = arith.constant dense<0.000000e+00> : vector<8x128xf32>
    %46 = tpu.matmul %44, %45, %cst_30 {dimension_numbers = #tpu.dot_dimension_numbers<[1], [0], [0], [1], [0, 0, 1, 1], [], []>} : vector<8x128xbf16>, vector<128x128xbf16>, vector<8x128xf32> -> vector<8x128xf32>
    %c0_31 = arith.constant 0 : index
    %c0_32 = arith.constant 0 : index
    %47 = vector.load %arg11[%c0_31, %c0_32] : memref<1x128xf32, #tpu.memory_space<vmem>>, vector<1x128xf32>
    %48 = vector.broadcast %47 : vector<1x128xf32> to vector<8x128xf32>
    %49 = arith.addf %46, %48 : vector<8x128xf32>
    %cst_33 = arith.constant dense<0xFF800000> : vector<8xf32>
    %50 = vector.multi_reduction <maximumf>, %49, %cst_33 [1] : vector<8x128xf32> to vector<8xf32>
    %51 = vector.shape_cast %50 : vector<8xf32> to vector<8x1xf32>
    %52 = vector.broadcast %51 : vector<8x1xf32> to vector<8x128xf32>
    %53 = arith.subf %49, %52 : vector<8x128xf32>
    %54 = math.exp %53 : vector<8x128xf32>
    %cst_34 = arith.constant dense<0.000000e+00> : vector<8xf32>
    %55 = vector.multi_reduction <add>, %54, %cst_34 [1] : vector<8x128xf32> to vector<8xf32>
    %56 = vector.shape_cast %55 : vector<8xf32> to vector<8x1xf32>
    %cst_35 = arith.constant 1.000000e+00 : f32
    %57 = vector.broadcast %cst_35 : f32 to vector<8x1xf32>
    %58 = arith.divf %57, %56 : vector<8x1xf32>
    %59 = vector.broadcast %58 : vector<8x1xf32> to vector<8x128xf32>
    %60 = arith.mulf %54, %59 : vector<8x128xf32>
    %c0_36 = arith.constant 0 : index
    %c0_37 = arith.constant 0 : index
    %61 = vector.load %arg12[%c0_36, %c0_37] : memref<8x128xf32, #tpu.memory_space<vmem>>, vector<8x128xf32>
    tpu.vector_store %arg12[%c0_36, %c0_37], %60 {strides = array<i32>} : memref<8x128xf32, #tpu.memory_space<vmem>>, vector<8x128xf32>,
    return
  }
  func.func @transform_0(%arg0: i32) -> (i32, i32) {
    %c0_i32 = arith.constant 0 : i32
    %c0_i32_0 = arith.constant 0 : i32
    return %arg0, %c0_i32 : i32, i32
  }
  func.func @transform_1(%arg0: i32) -> (i32, i32) {
    %c0_i32 = arith.constant 0 : i32
    %c0_i32_0 = arith.constant 0 : i32
    %c0_i32_1 = arith.constant 0 : i32
    return %c0_i32, %c0_i32_0 : i32, i32
  }
  func.func @transform_2(%arg0: i32) -> (i32, i32) {
    %c0_i32 = arith.constant 0 : i32
    %c0_i32_0 = arith.constant 0 : i32
    %c0_i32_1 = arith.constant 0 : i32
    return %c0_i32, %c0_i32_0 : i32, i32
  }
  func.func @transform_3(%arg0: i32) -> (i32, i32) {
    %c0_i32 = arith.constant 0 : i32
    %c0_i32_0 = arith.constant 0 : i32
    %c0_i32_1 = arith.constant 0 : i32
    return %c0_i32, %c0_i32_0 : i32, i32
  }
  func.func @transform_4(%arg0: i32) -> (i32, i32) {
    %c0_i32 = arith.constant 0 : i32
    %c0_i32_0 = arith.constant 0 : i32
    %c0_i32_1 = arith.constant 0 : i32
    return %c0_i32, %c0_i32_0 : i32, i32
  }
  func.func @transform_5(%arg0: i32) -> (i32, i32) {
    %c0_i32 = arith.constant 0 : i32
    %c0_i32_0 = arith.constant 0 : i32
    %c0_i32_1 = arith.constant 0 : i32
    return %c0_i32, %c0_i32_0 : i32, i32
  }
  func.func @transform_6(%arg0: i32) -> (i32, i32) {
    %c0_i32 = arith.constant 0 : i32
    %c0_i32_0 = arith.constant 0 : i32
    %c0_i32_1 = arith.constant 0 : i32
    return %c0_i32, %c0_i32_0 : i32, i32
  }
  func.func @transform_7(%arg0: i32) -> (i32, i32) {
    %c0_i32 = arith.constant 0 : i32
    %c0_i32_0 = arith.constant 0 : i32
    %c0_i32_1 = arith.constant 0 : i32
    return %c0_i32, %c0_i32_0 : i32, i32
  }
  func.func @transform_8(%arg0: i32) -> (i32, i32) {
    %c0_i32 = arith.constant 0 : i32
    %c0_i32_0 = arith.constant 0 : i32
    %c0_i32_1 = arith.constant 0 : i32
    return %c0_i32, %c0_i32_0 : i32, i32
  }
  func.func @transform_9(%arg0: i32) -> (i32, i32) {
    %c0_i32 = arith.constant 0 : i32
    %c0_i32_0 = arith.constant 0 : i32
    %c0_i32_1 = arith.constant 0 : i32
    return %c0_i32, %c0_i32_0 : i32, i32
  }
  func.func @transform_10(%arg0: i32) -> (i32, i32) {
    %c0_i32 = arith.constant 0 : i32
    %c0_i32_0 = arith.constant 0 : i32
    %c0_i32_1 = arith.constant 0 : i32
    return %c0_i32, %c0_i32_0 : i32, i32
  }
  func.func @transform_11(%arg0: i32) -> (i32, i32) {
    %c0_i32 = arith.constant 0 : i32
    %c0_i32_0 = arith.constant 0 : i32
    return %arg0, %c0_i32 : i32, i32
  }
}

</mosaic_0001>

<bundles_post_ra>
// kernel: tpu_custom_call.1
= control target key start
LH: loop header
LB: loop body
LE: loop exit
PB: predicated region body
PF: predicated region fallthrough
CT: control target
= control target key end

     0   :  { %s2249_s0 = inlined_call_operand.hbm [shape: bf16[16,128], index: 0, kind: input, shape index: {}]   ;;  %s2250_s1 = inlined_call_operand.hbm [shape: bf16[128,128], index: 1, kind: input, shape index: {}]   ;;  %s2251_s2 = inlined_call_operand.vmem [shape: f32[1,128], index: 2, kind: input, shape index: {}]   ;;  %s2252_s3 = inlined_call_operand.hbm [shape: bf16[128,128], index: 3, kind: input, shape index: {}]   ;;  %s2253_s4 = inlined_call_operand.vmem [shape: f32[1,128], index: 4, kind: input, shape index: {}]   ;;  %s2254_s5 = inlined_call_operand.hbm [shape: bf16[128,128], index: 5, kind: input, shape index: {}]   ;;  %s2255_s6 = inlined_call_operand.vmem [shape: f32[1,128], index: 6, kind: input, shape index: {}]   ;;  %s2256_s7 = inlined_call_operand.hbm [shape: bf16[128,128], index: 7, kind: input, shape index: {}]   ;;  %s2257_s8 = inlined_call_operand.vmem [shape: f32[1,128], index: 8, kind: input, shape index: {}]   ;;  %s2258_s9 = inlined_call_operand.hbm [shape: bf16[128,128], index: 9, kind: input, shape index: {}]   ;;  %s2259_s10 = inlined_call_operand.vmem [shape: f32[1,128], index: 10, kind: input, shape index: {}]   ;;  %s2260_s11 = inlined_call_operand.hbm [shape: f32[16,128], index: 11, kind: output, shape index: {}]  }
   0x1   :  { %2265 = sst [smem:[#allocation19_spill]] %s2250_s1 }
   0x2   :  { %2266 = sst [smem:[#allocation20_spill]] %s2257_s8 }
   0x3   :  { %2267 = sst [smem:[#allocation21_spill]] %s2259_s10 }
   0x4   :  { %2268 = sst [smem:[#allocation22_spill]] %s2260_s11 }
   0x5   :  { %16 = vsyncpa [#allocation3], 0 }
   0x6   :  { %18 = vsyncpa [#allocation3 + $0x1], 0 }
   0x7   :  { %19 = vsyncpa [#allocation6], 0 }
   0x8   :  { %20 = vsyncpa [#allocation9], 0 }
   0x9   :  { %21 = vsyncpa [#allocation12], 0 }
   0xa   :  { %22 = vsyncpa [#allocation4], 0 }
   0xb   :  { %24 = vsyncpa [#allocation4 + $0x1], 0  ;;  %s1869_s17 = smov 0   ;;  %s1871_s18 = smov 0  }
   0xc   :  { %s1873_s19 = smov 0   ;;  %s1875_s20 = smov 0  }
   0xd LB: > { %s1798_s21 = smov [#allocation5]   ;;  %s1890_s23 = sadd.s32 4294967295, %s1796_s20   ;;  %s1796_s20 = sphi %s1875_s20, %s2294_s20   ;;  %s1792_s19 = sphi %s1873_s19, %s2293_s19   ;;  %s1788_s18 = sphi %s1871_s18, %s2292_s18   ;;  %s1784_s17 = sphi %s1869_s17, %s2291_s17  }
   0xe   : > { %s309_s22 = sshll.u32 %s1798_s21, 4  ;;  %p1192_p0 = scmp.ge.s32.totalorder %s1796_s20, 1  ;;  %s1895_s22 = int_to_ptr.vmem [resolvable:$true] %s309_s22 }
   0xf   : > { %p2262_p1 = scmp.eq.s32.totalorder %s1890_s23, 0  ;;  %p297_p2 = scmp.lt.s32.totalorder %s1796_s20, 3 }
  0x10   : > { %s1799_s25 = smov [#allocation8]   ;;  %s1800_s28 = smov [#allocation7]  }
  0x11   : > { %p1897_p3 = pnand %p1192_p0, %p297_p2  ;;  %s341_s26 = sshll.u32 %s1799_s25, 4  ;;  %s1910_s26 = int_to_ptr.vmem [resolvable:$true] %s341_s26 }
  0x12   : > { %s325_s29 = sshll.u32 %s1800_s28, 4  ;;  %s2271_s1 = sld [smem:[#allocation19_spill]]  ;;  %s1912_s29 = int_to_ptr.vmem [resolvable:$true] %s325_s29 }
  0x13   : > { %s2269_s24 = scalar_select %p1897_p3, 1, 0 }
  0x14   : > { %p1427_p5 = pneg %p1897_p3 }
  0x16   : > { %p1906_p6 = pnand %p1427_p5, %p2262_p1 }
  0x18   : > { %s1548_s13 = scalar_lea.hbm %s2271_s1, 1024  ;;  %p1922_p8 = pneg %p1906_p6 }
  0x19   : > { %p1549_p7 = scmp.ne.s32.totalorder %s2271_s1, %s1548_s13  ;;  %p1555_p11 = scmp.lt.u32.totalorder %s1548_s13, %s2271_s1 }
  0x1b   : > { %p1551_p9 = pnand %p1922_p8, %p1549_p7 }
  0x1d   : > { %p1552_p10 = pneg %p1551_p9 }
  0x1f   : > { %p1557_p12 = pnand %p1555_p11, %p1552_p10 }
  0x21   : > { %1560 = shalt.err (!%p1557_p12)
}
  0x22   : > { %s1561_s28 = scalar_lea.vmem %s1895_s22, 1024  ;;  %p1569_p5 = scmp.lt.s32.totalorder %s1895_s22, %s1895_s22 }
  0x23   : > { %p1562_p13 = scmp.ne.s32.totalorder %s1895_s22, %s1561_s28  ;;  %p1570_p4 = scmp.lt.s32.totalorder %s1561_s28, %s1561_s28 }
  0x25   : > { %p1564_p0 = pnand %p1562_p13, %p1922_p8  ;;  %p1571_p7 = por %p1570_p4, %p1569_p5 }
  0x27   : > { %p1565_p2 = pneg %p1564_p0 }
  0x29   : > { %p1572_p9 = pnand %p1571_p7, %p1565_p2 }
  0x2b   : > { %1575 = shalt.err (!%p1572_p9)
}
  0x2c   : > { %s1801_s30 = smov 64   ;;  %s1802_s12 = smov 4  }
  0x2d   : > { %1430 = dma.hbm_to_vmem [thread:$0]  (!%p1906_p6), %s2271_s1, 1024, %s1895_s22, [#allocation6], %s1801_s30, %s1801_s30, %s1802_s12  }
  0x2e   : > { %s1576_s25 = scalar_lea.hbm %s2254_s5, 1024 }
  0x2f   : > { %p1577_p4 = scmp.ne.s32.totalorder %s2254_s5, %s1576_s25  ;;  %p1583_p12 = scmp.lt.u32.totalorder %s1576_s25, %s2254_s5 }
  0x31   : > { %p1579_p10 = pnand %p1577_p4, %p1922_p8 }
  0x33   : > { %p1580_p11 = pneg %p1579_p10 }
  0x35   : > { %p1585_p13 = pnand %p1583_p12, %p1580_p11 }
  0x37   : > { %1588 = shalt.err (!%p1585_p13)
}
  0x38   : > { %s1589_s22 = scalar_lea.vmem %s1910_s26, 1024  ;;  %p1597_p7 = scmp.lt.s32.totalorder %s1910_s26, %s1910_s26 }
  0x39   : > { %p1590_p0 = scmp.ne.s32.totalorder %s1910_s26, %s1589_s22  ;;  %p1598_p9 = scmp.lt.s32.totalorder %s1589_s22, %s1589_s22 }
  0x3b   : > { %p1592_p2 = pnand %p1590_p0, %p1922_p8  ;;  %p1599_p4 = por %p1598_p9, %p1597_p7 }
  0x3d   : > { %p1593_p5 = pneg %p1592_p2 }
  0x3f   : > { %p1600_p10 = pnand %p1599_p4, %p1593_p5 }
  0x41   : > { %1603 = shalt.err (!%p1600_p10)
}
  0x42   : > { %1436 = dma.hbm_to_vmem [thread:$0]  (!%p1906_p6), %s2254_s5, 1024, %s1910_s26, [#allocation9], %s1801_s30, %s1801_s30, %s1802_s12  }
  0x43   : > { %s1604_s14 = scalar_lea.hbm %s2252_s3, 1024 }
  0x44   : > { %p1605_p11 = scmp.ne.s32.totalorder %s2252_s3, %s1604_s14  ;;  %p1611_p0 = scmp.lt.u32.totalorder %s1604_s14, %s2252_s3 }
  0x46   : > { %p1607_p12 = pnand %p1605_p11, %p1922_p8 }
  0x48   : > { %p1608_p13 = pneg %p1607_p12 }
  0x4a   : > { %p1613_p2 = pnand %p1611_p0, %p1608_p13 }
  0x4c   : > { %1616 = shalt.err (!%p1613_p2)
}
  0x4d   : > { %s1617_s26 = scalar_lea.vmem %s1912_s29, 1024  ;;  %p1625_p4 = scmp.lt.s32.totalorder %s1912_s29, %s1912_s29 }
  0x4e   : > { %p1618_p5 = scmp.ne.s32.totalorder %s1912_s29, %s1617_s26  ;;  %p1626_p10 = scmp.lt.s32.totalorder %s1617_s26, %s1617_s26 }
  0x50   : > { %p1620_p7 = pnand %p1618_p5, %p1922_p8  ;;  %p1627_p11 = por %p1626_p10, %p1625_p4 }
  0x52   : > { %p1621_p9 = pneg %p1620_p7 }
  0x54   : > { %p1628_p12 = pnand %p1627_p11, %p1621_p9 }
  0x56   : > { %1631 = shalt.err (!%p1628_p12)
}
  0x57   : > { %1433 = dma.hbm_to_vmem [thread:$0]  (!%p1906_p6), %s2252_s3, 1024, %s1912_s29, [#allocation6], %s1801_s30, %s1801_s30, %s1802_s12  }
  0x58   : > { %s1803_s10 = smov [#allocation10]   ;;  %s1804_s13 = smov [#allocation11]  }
  0x59   : > { %s357_s11 = sshll.u32 %s1803_s10, 4  ;;  %s373_s14 = sshll.u32 %s1804_s13, 4  ;;  %s358_s11 = int_to_ptr.vmem [resolvable:$true] %s357_s11  ;;  %s374_s14 = int_to_ptr.vmem [resolvable:$true] %s373_s14 }
  0x5a   : > { %s1632_s25 = scalar_lea.hbm %s2256_s7, 1024 }
  0x5b   : > { %p1633_p13 = scmp.ne.s32.totalorder %s2256_s7, %s1632_s25  ;;  %p1639_p5 = scmp.lt.u32.totalorder %s1632_s25, %s2256_s7 }
  0x5d   : > { %p1635_p0 = pnand %p1633_p13, %p1922_p8 }
  0x5f   : > { %p1636_p2 = pneg %p1635_p0 }
  0x61   : > { %p1641_p7 = pnand %p1639_p5, %p1636_p2 }
  0x63   : > { %1644 = shalt.err (!%p1641_p7)
}
  0x64   : > { %s1645_s29 = scalar_lea.vmem %s358_s11, 1024  ;;  %p1653_p11 = scmp.lt.s32.totalorder %s358_s11, %s358_s11 }
  0x65   : > { %p1646_p9 = scmp.ne.s32.totalorder %s358_s11, %s1645_s29  ;;  %p1654_p12 = scmp.lt.s32.totalorder %s1645_s29, %s1645_s29 }
  0x67   : > { %p1648_p4 = pnand %p1646_p9, %p1922_p8  ;;  %p1655_p1 = por %p1654_p12, %p1653_p11 }
  0x69   : > { %p1649_p10 = pneg %p1648_p4 }
  0x6b   : > { %p1656_p3 = pnand %p1655_p1, %p1649_p10 }
  0x6d   : > { %1659 = shalt.err (!%p1656_p3)
}
  0x6e   : > { %1439 = dma.hbm_to_vmem [thread:$0]  (!%p1906_p6), %s2256_s7, 1024, %s358_s11, [#allocation9], %s1801_s30, %s1801_s30, %s1802_s12  }
  0x6f   : > { %s1660_s15 = scalar_lea.hbm %s2258_s9, 1024 }
  0x70   : > { %p1661_p1 = scmp.ne.s32.totalorder %s2258_s9, %s1660_s15  ;;  %p1667_p0 = scmp.lt.u32.totalorder %s1660_s15, %s2258_s9 }
  0x72   : > { %p1663_p3 = pnand %p1661_p1, %p1922_p8 }
  0x74   : > { %p1664_p13 = pneg %p1663_p3 }
  0x76   : > { %p1669_p2 = pnand %p1667_p0, %p1664_p13 }
  0x78   : > { %1672 = shalt.err (!%p1669_p2)
}
  0x79   : > { %s1673_s22 = scalar_lea.vmem %s374_s14, 1024  ;;  %p1681_p4 = scmp.lt.s32.totalorder %s374_s14, %s374_s14 }
  0x7a   : > { %p1674_p5 = scmp.ne.s32.totalorder %s374_s14, %s1673_s22  ;;  %p1682_p10 = scmp.lt.s32.totalorder %s1673_s22, %s1673_s22 }
  0x7c   : > { %p1676_p7 = pnand %p1674_p5, %p1922_p8  ;;  %p1683_p11 = por %p1682_p10, %p1681_p4 }
  0x7e   : > { %p1677_p9 = pneg %p1676_p7 }
  0x80   : > { %p1684_p12 = pnand %p1683_p11, %p1677_p9 }
  0x82   : > { %1687 = shalt.err (!%p1684_p12)
}
  0x83   : > { %1442 = dma.hbm_to_vmem [thread:$0]  (!%p1906_p6), %s2258_s9, 1024, %s374_s14, [#allocation12], %s1801_s30, %s1801_s30, %s1802_s12  }
  0x84   : > { %s1191_s27 = sadd.s32 4294967294, %s1796_s20   ;;  %s2042_s16 = sadd.s32 1, %s1796_s20  }
  0x85   : > { %s37_s1 = sadd.s32 1, %s1792_s19  ;;  %s34_s8 = ssub.s32 %s1796_s20, %s2042_s16 }
  0x86   : > { %p44_p8 = scmp.ne.s32.totalorder %s1792_s19, %s1788_s18  ;;  %p35_p1 = scmp.eq.s32.totalorder %s34_s8, 0 }
  0x87   : > { %p45_p3 = scmp.eq.s32.totalorder %s1796_s20, 0  ;;  %p50_p13 = scmp.ne.s32.totalorder %s1788_s18, %s1784_s17 }
  0x88   : > { %p284_p0 = scmp.eq.s32.totalorder %s1890_s23, 1  ;;  %p2273_p5 = scmp.eq.s32.totalorder %s1890_s23, 0 }
  0x89   : > { %s2054_s10 = scalar_select %p35_p1, %s1792_s19, %s37_s1  }
  0x8a   : > { %p46_p2 = por %p45_p3, %p44_p8  ;;  %p2058_p7 = por %p2273_p5, %p50_p13 }
  0x8b   : > { %p2062_p6 = por %p284_p0, %p44_p8  ;;  %p290_p9 = scmp.eq.s32.totalorder %s1191_s27, 1 }
  0x8c   : > { %p1456_p4 = scmp.lt.s32.totalorder %s1796_s20, 2  ;;  %s390_s12 = sand.u32 1, %s1792_s19  }
  0x8d   : > { %s2275_s30 = scalar_select %p2062_p6, 1, 0 }
  0x8e   : > { %p2068_p10 = por %p290_p9, %p50_p13  ;;  %s1199_s15 = sshll.u32 %s390_s12, 2 }
  0x8f   : > { %s1200_s21 = sshll.u32 %s1796_s20, 6  ;;  %s394_s22 = scalar_lea.vmem [#allocation2], %s1199_s15 }
  0x90   : > { %s2276_s14 = scalar_select %p2068_p10, 1, 0 }
  0x91   : > { %s2076_s26 = scalar_lea.hbm %s2249_s0, %s1200_s21  ;;  %s401_s11 = sshll.u32 %s394_s22, 4  ;;  %s2082_s11 = int_to_ptr.vmem [resolvable:$true] %s401_s11 }
  0x92   : > { %p2078_p11 = pnand %p1456_p4, %p46_p2  ;;  %s391_s27 = scalar_lea.sflag [#allocation3], %s390_s12 }
  0x93   : > { %s1688_s1 = scalar_lea.hbm %s2076_s26, 64  ;;  %s1693_s21 = scalar_lea.hbm %s2249_s0, 128 }
  0x94   : > { %p1689_p12 = scmp.ne.s32.totalorder %s2076_s26, %s1688_s1  ;;  %p1690_p8 = pneg %p2078_p11 }
  0x95   : > { %p1694_p13 = scmp.lt.u32.totalorder %s2076_s26, %s2249_s0  ;;  %p1695_p0 = scmp.lt.u32.totalorder %s1693_s21, %s1688_s1 }
  0x96   : > { %p1691_p1 = pnand %p1690_p8, %p1689_p12  ;;  %p1697_p5 = scmp.lt.u32.totalorder %s1688_s1, %s2076_s26 }
  0x97   : > { %p1696_p2 = por %p1695_p0, %p1694_p13 }
  0x98   : > { %p1692_p3 = pneg %p1691_p1 }
  0x99   : > { %p1698_p9 = por %p1697_p5, %p1696_p2 }
  0x9b   : > { %p1699_p4 = pnand %p1698_p9, %p1692_p3 }
  0x9d   : > { %1702 = shalt.err (!%p1699_p4)
}
  0x9e   : > { %s1703_s12 = scalar_lea.vmem %s2082_s11, 64  ;;  %s1805_s22 = smov [#allocation2]  }
  0x9f   : > { %p1704_p12 = scmp.ne.s32.totalorder %s2082_s11, %s1703_s12  ;;  %s1708_s8 = sshll.u32 %s1805_s22, 4  ;;  %s1709_s8 = int_to_ptr.vmem [resolvable:$false] %s1708_s8 }
  0xa0   : > { %s1710_s15 = scalar_lea.vmem %s1709_s8, 128  ;;  %p1711_p6 = scmp.lt.s32.totalorder %s2082_s11, %s1709_s8 }
  0xa1   : > { %p1706_p1 = pnand %p1704_p12, %p1690_p8  ;;  %p1712_p13 = scmp.lt.s32.totalorder %s1710_s15, %s1703_s12 }
  0xa3   : > { %p1707_p10 = pneg %p1706_p1  ;;  %p1713_p0 = por %p1712_p13, %p1711_p6 }
  0xa5   : > { %p1714_p2 = pnand %p1713_p0, %p1707_p10 }
  0xa7   : > { %1717 = shalt.err (!%p1714_p2)
}
  0xa8   : > { %1446 = dma.hbm_to_vmem [thread:$0]  (!%p2078_p11), %s2076_s26, 64, %s2082_s11, %s391_s27  }
  0xa9   : > { %p2278_p3 = scmp.ne.s32.totalorder %s2269_s24, 0 }
  0xaa   : > { %s2112_s1 = sand.u32 (!%p2278_p3), 1, %s1788_s18  }
  0xab   : > { %410 = sbr.rel (%p2278_p3) target bundleno = 1638 (0x666), region = 64  ;;  %s1202_s21 = sshll.u32 (!%p2278_p3), %s2112_s1, 2 }
  0xac   : > { %s413_s25 = scalar_lea.sflag (!%p2278_p3), [#allocation3], %s2112_s1  ;;  %s2116_s28 = scalar_lea.vmem (!%p2278_p3), [#allocation2], %s1202_s21 }
  0xb2   : > { %1763 = dma.done.wait (%p2058_p7), %s413_s25, 64  }
  0xb3   : > { %1765 = vsyncadd (%p2058_p7), %s413_s25, 4294967232  ;;  %p2279_p6 = scmp.eq.s32.totalorder %s1890_s23, 0 }
  0xb5   : > { %1767 = dma.done.wait (%p2279_p6), [#allocation6], 2048   ;;  %p2280_p10 = pmov %p2279_p6 }
  0xb6   : > { %p2281_p11 = pmov %p2279_p6 }
  0xb7   : > { %1769 = vsyncadd (%p2280_p10), [#allocation6], 4294965248 }
  0xb8   : > { %1771 = dma.done.wait (%p2281_p11), [#allocation9], 2048   ;;  %p2282_p8 = pmov %p2279_p6 }
  0xb9   : > { %p2283_p5 = pmov %p2279_p6 }
  0xba   : > { %1773 = vsyncadd (%p2282_p8), [#allocation9], 4294965248 }
  0xbb   : > { %1775 = dma.done.wait (%p2283_p5), [#allocation12], 1024   ;;  %p2284_p9 = pmov %p2283_p5 }
  0xbc   : > { %v1806_v0 = vmov 0.0   ;;  %vm1807_vm0 = vmmov 0   ;;  %v1504_v1 = vld [vmem:[#allocation5] sm:$0xff]   ;;  %v1505_v2 = vld [vmem:[#allocation5 + $0x8] sm:$0xff]   ;;  %v1506_v3 = vld [vmem:[#allocation5 + $0x10] sm:$0xff]   ;;  %s2285_s8 = sld [smem:[#allocation20_spill]] }
  0xbd   : > { %1777 = vsyncadd (%p2284_p9), [#allocation12], 4294966272  ;;  %1303 = vmatprep.subr.bf16.mxu0 %v1806_v0  ;;  %1319 = vmatprep.mubr.msk.bf16.mxu0 %vm1807_vm0, %v1806_v0  ;;  %v1512_v4 = vld [vmem:[#allocation7] sm:$0xff]   ;;  %v1507_v5 = vld [vmem:[#allocation5 + $0x18] sm:$0xff]   ;;  %s2286_s25 = sld [smem:[#allocation21_spill]]  ;;  %s1255_s24 = sshll.u32 %s1890_s23, 7 }
  0xbe   : > { %1323 = vmatprep.subr.bf16.mxu1 %v1806_v0  ;;  %1339 = vmatprep.mubr.msk.bf16.mxu1 %vm1807_vm0, %v1806_v0  ;;  %v1513_v6 = vld [vmem:[#allocation7 + $0x8] sm:$0xff]   ;;  %v1508_v7 = vld [vmem:[#allocation5 + $0x20] sm:$0xff]   ;;  %v1514_v8 = vld [vmem:[#allocation7 + $0x10] sm:$0xff]   ;;  %s2287_s27 = sld [smem:[#allocation22_spill]]  ;;  %s1060_s22 = scalar_lea.sflag [#allocation4], %s2112_s1 }
  0xbf   : > { %1304 = vmatpush3.bf16.msra.mxu0 %v1504_v1  ;;  %1324 = vmatpush3.bf16.msra.mxu1 %v1512_v4  ;;  %v1509_v9 = vld [vmem:[#allocation5 + $0x28] sm:$0xff]   ;;  %v1515_v10 = vld [vmem:[#allocation7 + $0x18] sm:$0xff]   ;;  %v1510_v11 = vld [vmem:[#allocation5 + $0x30] sm:$0xff]   ;;  %p2288_p4 = scmp.ne.s32.totalorder %s2275_s30, 0  ;;  %s1808_s23 = smov [#allocation13]  }
  0xc0   : > { %1305 = vmatprep.subr.bf16.mxu0 %v1806_v0  ;;  %1325 = vmatprep.subr.bf16.mxu1 %v1806_v0  ;;  %v1516_v12 = vld [vmem:[#allocation7 + $0x20] sm:$0xff]   ;;  %v1511_v13 = vld [vmem:[#allocation5 + $0x38] sm:$0xff]   ;;  %v1517_v14 = vld [vmem:[#allocation7 + $0x28] sm:$0xff]   ;;  %s1722_s15 = sshll.u32 %s1808_s23, 4  ;;  %s1723_s15 = int_to_ptr.vmem [resolvable:$false] %s1722_s15 }
  0xc1   : > { %v476_v15 = vld [vmem:[%s2116_s28] sm:$0xf]  ;;  %v1518_v16 = vld [vmem:[#allocation7 + $0x30] sm:$0xff]   ;;  %v1520_v18 = vld [vmem:[#allocation8] sm:$0xff]   ;;  %s1208_s28 = sshll.u32 %s2112_s1, 3  ;;  %s1724_s21 = scalar_lea.vmem %s1723_s15, 256 }
  0xc2   : > { %v1519_v17 = vld [vmem:[#allocation7 + $0x38] sm:$0xff]   ;;  %v1521_v19 = vld [vmem:[#allocation8 + $0x8] sm:$0xff]   ;;  %v1522_v20 = vld [vmem:[#allocation8 + $0x10] sm:$0xff]   ;;  %s474_s13 = scalar_lea.vmem [#allocation13], %s1208_s28 }
  0xc3   : > { %1306 = vmatpush3.bf16.msra.mxu0 %v1505_v2  ;;  %1326 = vmatpush3.bf16.msra.mxu1 %v1513_v6  ;;  %v1523_v21 = vld [vmem:[#allocation8 + $0x18] sm:$0xff]   ;;  %v1524_v22 = vld [vmem:[#allocation8 + $0x20] sm:$0xff]   ;;  %v1525_v23 = vld [vmem:[#allocation8 + $0x28] sm:$0xff]   ;;  %s1073_s26 = sshll.u32 %s474_s13, 4  ;;  %s2207_s26 = int_to_ptr.vmem [resolvable:$true] %s1073_s26 }
  0xc4   : > { %1307 = vmatprep.subr.bf16.mxu0 %v1806_v0  ;;  %1327 = vmatprep.subr.bf16.mxu1 %v1806_v0  ;;  %v1209_v24 = vld [vmem:[%s2251_s2] ss:$0 sm:$0xff]  ;;  %v1526_v33 = vld [vmem:[#allocation8 + $0x30] sm:$0xff]   ;;  %v1528_v35 = vld [vmem:[#allocation10] sm:$0xff]   ;;  %s2205_s12 = scalar_lea.hbm %s2287_s27, %s1255_s24  ;;  %p1725_p13 = scmp.lt.s32.totalorder %s2207_s26, %s1723_s15 }
  0xc5   : > { %v1527_v34 = vld [vmem:[#allocation8 + $0x38] sm:$0xff]   ;;  %v1529_v36 = vld [vmem:[#allocation10 + $0x8] sm:$0xff]   ;;  %v1530_v37 = vld [vmem:[#allocation10 + $0x10] sm:$0xff]  }
  0xc6   : > { %v1531_v38 = vld [vmem:[#allocation10 + $0x18] sm:$0xff]   ;;  %v1532_v39 = vld [vmem:[#allocation10 + $0x20] sm:$0xff]   ;;  %v1533_v40 = vld [vmem:[#allocation10 + $0x28] sm:$0xff]  }
  0xc7   : > { %1308 = vmatpush3.bf16.msra.mxu0 %v1506_v3  ;;  %1328 = vmatpush3.bf16.msra.mxu1 %v1514_v8  ;;  %v1218_v41 = vld [vmem:[%s2253_s4] ss:$0 sm:$0xff]  ;;  %v1534_v50 = vld [vmem:[#allocation10 + $0x30] sm:$0xff]   ;;  %v1536_v52 = vld [vmem:[#allocation11] sm:$0xff]  }
  0xc8   : > { %1309 = vmatprep.subr.bf16.mxu0 %v1806_v0  ;;  %1329 = vmatprep.subr.bf16.mxu1 %v1806_v0  ;;  %v1535_v51 = vld [vmem:[#allocation10 + $0x38] sm:$0xff]   ;;  %v1537_v53 = vld [vmem:[#allocation11 + $0x8] sm:$0xff]   ;;  %v1538_v54 = vld [vmem:[#allocation11 + $0x10] sm:$0xff]  }
  0xc9   : > { %v1539_v55 = vld [vmem:[#allocation11 + $0x18] sm:$0xff]   ;;  %v1540_v56 = vld [vmem:[#allocation11 + $0x20] sm:$0xff]   ;;  %v1541_v57 = vld [vmem:[#allocation11 + $0x28] sm:$0xff]  }
  0xca   : > { %v1227_v58 = vld [vmem:[%s2255_s6] ss:$0 sm:$0xff]  ;;  %v1542_v4 = vld [vmem:[#allocation11 + $0x30] sm:$0xff]  }
  0xcb   : > { %1310 = vmatpush3.bf16.msra.mxu0 %v1507_v5  ;;  %1330 = vmatpush3.bf16.msra.mxu1 %v1515_v10  ;;  %v1543_v5 = vld [vmem:[#allocation11 + $0x38] sm:$0xff]  }
  0xcc   : > { %1311 = vmatprep.subr.bf16.mxu0 %v1806_v0  ;;  %1331 = vmatprep.subr.bf16.mxu1 %v1806_v0  ;;  %v1236_v6 = vld [vmem:[%s2285_s8] ss:$0 sm:$0xff]  ;;  %s1718_s8 = scalar_lea.vmem %s2207_s26, 128 }
  0xcd   : > { %p1719_p7 = scmp.ne.s32.totalorder %s2207_s26, %s1718_s8  ;;  %p1726_p0 = scmp.lt.s32.totalorder %s1724_s21, %s1718_s8 }
  0xcf   : > { %1312 = vmatpush3.bf16.msra.mxu0 %v1508_v7  ;;  %1332 = vmatpush3.bf16.msra.mxu1 %v1516_v12  ;;  %p1720_p12 = pnand %p1719_p7, %p2288_p4  ;;  %p1727_p2 = por %p1726_p0, %p1725_p13 }
  0xd0   : > { %1313 = vmatprep.subr.bf16.mxu0 %v1806_v0  ;;  %1333 = vmatprep.subr.bf16.mxu1 %v1806_v0 }
  0xd1   : > { %p1721_p1 = pneg %p1720_p12 }
  0xd3   : > { %1314 = vmatpush3.bf16.msra.mxu0 %v1509_v9  ;;  %1334 = vmatpush3.bf16.msra.mxu1 %v1517_v14  ;;  %p1728_p3 = pnand %p1727_p2, %p1721_p1 }
  0xd4   : > { %1315 = vmatprep.subr.bf16.mxu0 %v1806_v0  ;;  %1335 = vmatprep.subr.bf16.mxu1 %v1806_v0 }
  0xd7   : > { %1316 = vmatpush3.bf16.msra.mxu0 %v1510_v11  ;;  %1336 = vmatpush3.bf16.msra.mxu1 %v1518_v16 }
  0xd8   : > { %1317 = vmatprep.subr.bf16.mxu0 %v1806_v0  ;;  %1337 = vmatprep.subr.bf16.mxu1 %v1806_v0 }
  0xdb   : > { %1318 = vmatpush3.bf16.msra.mxu0 %v1511_v13  ;;  %1338 = vmatpush3.bf16.msra.mxu1 %v1519_v17 }
  0xdc   : > { %1343 = vmatprep.subr.bf16.mxu0 %v1806_v0  ;;  %1363 = vmatprep.subr.bf16.mxu1 %v1806_v0 }
  0xde   : > { %1320 = vmatmul.mubr.bf16.vlgmr.msra.gmra.mrb[0].mxu0 %v476_v15 }
  0xdf   : > { %1359 = vmatprep.mubr.msk.bf16.mxu0 %vm1807_vm0, %v1806_v0  ;;  %1344 = vmatpush3.bf16.msra.mxu0 %v1520_v18 }
  0xe0   : > { %1345 = vmatprep.subr.bf16.mxu0 %v1806_v0 }
  0xe3   : > { %1346 = vmatpush3.bf16.msra.mxu0 %v1521_v19 }
  0xe4   : > { %1347 = vmatprep.subr.bf16.mxu0 %v1806_v0 }
  0xe7   : > { %1348 = vmatpush3.bf16.msra.mxu0 %v1522_v20 }
  0xe8   : > { %1349 = vmatprep.subr.bf16.mxu0 %v1806_v0 }
  0xeb   : > { %1350 = vmatpush3.bf16.msra.mxu0 %v1523_v21 }
  0xec   : > { %1351 = vmatprep.subr.bf16.mxu0 %v1806_v0 }
  0xef   : > { %1352 = vmatpush3.bf16.msra.mxu0 %v1524_v22 }
  0xf0   : > { %1353 = vmatprep.subr.bf16.mxu0 %v1806_v0 }
  0xf3   : > { %1354 = vmatpush3.bf16.msra.mxu0 %v1525_v23 }
  0xf4   : > { %1355 = vmatprep.subr.bf16.mxu0 %v1806_v0 }
  0xf7   : > { %1356 = vmatpush3.bf16.msra.mxu0 %v1526_v33 }
  0xf8   : > { %1357 = vmatprep.subr.bf16.mxu0 %v1806_v0 }
  0xfb   : > { %1358 = vmatpush3.bf16.msra.mxu0 %v1527_v34 }
  0xfc   : > { %1383 = vmatprep.subr.bf16.mxu0 %v1806_v0 }
 0x1b1   : > { %v582_v25 = vpop.f32.mrb[0].mxu0 }
 0x1b2   : > { %v583_v26 = vadd.f32 %v1209_v24, %v582_v25  ;;  %v1321_v27 = vpop.f32.mrb[1].mxu0 }
 0x1b3   : > { %v585_v28 = vpop.f32.mrb[2].mxu0 }
 0x1b4   : > { %vm588_vm1 = vcmp.gt.f32.partialorder %v583_v26, 0.0  ;;  %v589_v29 = vmul.f32 0.2, %v583_v26  ;;  %v1322_v30 = vpop.f32.mrb[3].mxu0 }
 0x1b6   : > { %v590_v31 = vsel %vm588_vm1, %v583_v26, %v589_v29 }
 0x1b7   : > { %v591_v32 = vpack.c.bf16 %v590_v31, %v590_v31 }
 0x1b9   : > { %1340 = vmatmul.mubr.bf16.vlgmr.msra.gmra.mrb[0].mxu1 %v591_v32 }
 0x1ba   : > { %1379 = vmatprep.mubr.msk.bf16.mxu1 %vm1807_vm0, %v1806_v0  ;;  %1364 = vmatpush3.bf16.msra.mxu1 %v1528_v35 }
 0x1bb   : > { %1365 = vmatprep.subr.bf16.mxu1 %v1806_v0 }
 0x1be   : > { %1366 = vmatpush3.bf16.msra.mxu1 %v1529_v36 }
 0x1bf   : > { %1367 = vmatprep.subr.bf16.mxu1 %v1806_v0 }
 0x1c2   : > { %1368 = vmatpush3.bf16.msra.mxu1 %v1530_v37 }
 0x1c3   : > { %1369 = vmatprep.subr.bf16.mxu1 %v1806_v0 }
 0x1c6   : > { %1370 = vmatpush3.bf16.msra.mxu1 %v1531_v38 }
 0x1c7   : > { %1371 = vmatprep.subr.bf16.mxu1 %v1806_v0 }
 0x1ca   : > { %1372 = vmatpush3.bf16.msra.mxu1 %v1532_v39 }
 0x1cb   : > { %1373 = vmatprep.subr.bf16.mxu1 %v1806_v0 }
 0x1ce   : > { %1374 = vmatpush3.bf16.msra.mxu1 %v1533_v40 }
 0x1cf   : > { %1375 = vmatprep.subr.bf16.mxu1 %v1806_v0 }
 0x1d2   : > { %1376 = vmatpush3.bf16.msra.mxu1 %v1534_v50 }
 0x1d3   : > { %1377 = vmatprep.subr.bf16.mxu1 %v1806_v0 }
 0x1d6   : > { %1378 = vmatpush3.bf16.msra.mxu1 %v1535_v51 }
 0x28c   : > { %v697_v42 = vpop.f32.mrb[0].mxu1 }
 0x28d   : > { %v698_v43 = vadd.f32 %v1218_v41, %v697_v42  ;;  %v1341_v44 = vpop.f32.mrb[1].mxu1 }
 0x28e   : > { %v700_v45 = vpop.f32.mrb[2].mxu1 }
 0x28f   : > { %vm703_vm2 = vcmp.gt.f32.partialorder %v698_v43, 0.0  ;;  %v704_v46 = vmul.f32 0.2, %v698_v43  ;;  %v1342_v47 = vpop.f32.mrb[3].mxu1 }
 0x291   : > { %v705_v48 = vsel %vm703_vm2, %v698_v43, %v704_v46 }
 0x292   : > { %v706_v49 = vpack.c.bf16 %v705_v48, %v705_v48 }
 0x294   : > { %1360 = vmatmul.mubr.bf16.vlgmr.msra.gmra.mrb[4].mxu0 %v706_v49 }
 0x295   : > { %1399 = vmatprep.mubr.msk.bf16.mxu0 %vm1807_vm0, %v1806_v0  ;;  %1384 = vmatpush3.bf16.msra.mxu0 %v1536_v52 }
 0x296   : > { %1385 = vmatprep.subr.bf16.mxu0 %v1806_v0 }
 0x299   : > { %1386 = vmatpush3.bf16.msra.mxu0 %v1537_v53 }
 0x29a   : > { %1387 = vmatprep.subr.bf16.mxu0 %v1806_v0 }
 0x29d   : > { %1388 = vmatpush3.bf16.msra.mxu0 %v1538_v54 }
 0x29e   : > { %1389 = vmatprep.subr.bf16.mxu0 %v1806_v0 }
 0x2a1   : > { %1390 = vmatpush3.bf16.msra.mxu0 %v1539_v55 }
 0x2a2   : > { %1391 = vmatprep.subr.bf16.mxu0 %v1806_v0 }
 0x2a5   : > { %1392 = vmatpush3.bf16.msra.mxu0 %v1540_v56 }
 0x2a6   : > { %1393 = vmatprep.subr.bf16.mxu0 %v1806_v0 }
 0x2a9   : > { %1394 = vmatpush3.bf16.msra.mxu0 %v1541_v57 }
 0x2aa   : > { %1395 = vmatprep.subr.bf16.mxu0 %v1806_v0 }
 0x2ad   : > { %1396 = vmatpush3.bf16.msra.mxu0 %v1542_v4 }
 0x2ae   : > { %1397 = vmatprep.subr.bf16.mxu0 %v1806_v0  ;;  %v1245_v0 = vld [vmem:[%s2286_s25] ss:$0 sm:$0xff] }
 0x2b1   : > { %1398 = vmatpush3.bf16.msra.mxu0 %v1543_v5 }
 0x367   : > { %v812_v59 = vpop.f32.mrb[4].mxu0 }
 0x368   : > { %v813_v60 = vadd.f32 %v1227_v58, %v812_v59  ;;  %v1361_v61 = vpop.f32.mrb[5].mxu0 }
 0x369   : > { %v815_v62 = vpop.f32.mrb[6].mxu0 }
 0x36a   : > { %vm818_vm3 = vcmp.gt.f32.partialorder %v813_v60, 0.0  ;;  %v819_v63 = vmul.f32 0.2, %v813_v60  ;;  %v1362_v1 = vpop.f32.mrb[7].mxu0 }
 0x36c   : > { %v820_v2 = vsel %vm818_vm3, %v813_v60, %v819_v63 }
 0x36d   : > { %v821_v3 = vpack.c.bf16 %v820_v2, %v820_v2 }
 0x36f   : > { %1380 = vmatmul.mubr.bf16.vlgmr.msra.gmra.mrb[4].mxu1 %v821_v3 }
 0x442   : > { %v927_v7 = vpop.f32.mrb[4].mxu1 }
 0x443   : > { %v928_v8 = vadd.f32 %v1236_v6, %v927_v7  ;;  %v1381_v9 = vpop.f32.mrb[5].mxu1 }
 0x444   : > { %v930_v10 = vpop.f32.mrb[6].mxu1 }
 0x445   : > { %vm933_vm4 = vcmp.gt.f32.partialorder %v928_v8, 0.0  ;;  %v934_v11 = vmul.f32 0.2, %v928_v8  ;;  %v1382_v12 = vpop.f32.mrb[7].mxu1 }
 0x447   : > { %v935_v13 = vsel %vm933_vm4, %v928_v8, %v934_v11 }
 0x448   : > { %v936_v14 = vpack.c.bf16 %v935_v13, %v935_v13 }
 0x44a   : > { %1400 = vmatmul.mubr.bf16.vlgmr.msra.gmra.mrb[8].mxu0 %v936_v14 }
 0x51d   : > { %v1042_v15 = vpop.f32.mrb[8].mxu0 }
 0x51e   : > { %v1043_v16 = vadd.f32 %v1245_v0, %v1042_v15  ;;  %v1401_v17 = vpop.f32.mrb[9].mxu0 }
 0x51f   : > { %v1045_v18 = vpop.f32.mrb[10].mxu0 }
 0x520   : > { %1048 = vmax.xlane.f32.xlu0 %v1043_v16  ;;  %v1402_v19 = vpop.f32.mrb[11].mxu0 }
 0x5ad   : > { %v1049_v20 = vpop.xlane.xlu0 %1048 }
 0x5ae   : > { %v1050_v21 = vsub.f32 %v1043_v16, %v1049_v20 }
 0x5b0   : > { %v1051_v22 = vmul.f32 1.442695, %v1050_v21 }
 0x5b2   : > { %1544 = vpow2.f32 %v1051_v22 }
 0x5bc   : > { %v1545_v23 = vpop.eup %1544 }
 0x5bd   : > { %1053 = vadd.xlane.f32.xlu0 %v1545_v23 }
 0x64a   : > { %v1054_v24 = vpop.xlane.xlu0 %1053 }
 0x64b   : > { %1546 = vrcp.f32 %v1054_v24 }
 0x655   : > { %v1547_v25 = vpop.eup %1546 }
 0x656   : > { %v1057_v26 = vmul.f32 %v1547_v25, %v1545_v23 }
 0x658   : > { %1058 = vst [vmem:[%s474_s13] sm:$0xff] %v1057_v26 }
 0x659   : > { %1731 = shalt.err (!%p1728_p3)
}
 0x65a   : > { %s1732_s1 = scalar_lea.hbm %s2205_s12, 128  ;;  %s1736_s24 = scalar_lea.hbm %s2287_s27, 256 }
 0x65b   : > { %p1733_p6 = scmp.ne.s32.totalorder %s2205_s12, %s1732_s1  ;;  %p1737_p8 = scmp.lt.u32.totalorder %s2205_s12, %s2287_s27 }
 0x65c   : > { %p1738_p5 = scmp.lt.u32.totalorder %s1736_s24, %s1732_s1  ;;  %p1740_p7 = scmp.lt.u32.totalorder %s1732_s1, %s2205_s12 }
 0x65d   : > { %p1734_p10 = pnand %p1733_p6, %p2288_p4 }
 0x65e   : > { %p1739_p9 = por %p1738_p5, %p1737_p8 }
 0x65f   : > { %p1735_p11 = pneg %p1734_p10 }
 0x660   : > { %p1741_p12 = por %p1740_p7, %p1739_p9 }
 0x662   : > { %p1742_p1 = pnand %p1741_p12, %p1735_p11 }
 0x664   : > { %1745 = shalt.err (!%p1742_p1)
}
 0x665   : > { %1425 = dma.vmem_to_hbm [thread:$0]  (%p2288_p4), %s2207_s26, 128, %s2205_s12, %s1060_s22  }
 0x666 PF: > { %s1085_s29 = sand.u32 1, %s1784_s17   ;;  %p2289_p13 = scmp.ne.s32.totalorder %s2276_s14, 0 }
 0x667   : > { %p2290_p0 = scmp.ge.s32.totalorder %s1796_s20, 2  ;;  %s1086_s8 = scalar_lea.sflag [#allocation4], %s1085_s29 }
 0x669   : > { %p1448_p2 = pnand %p2290_p0, %p2289_p13 }
 0x66b   : > { %1779 = dma.done.wait (!%p1448_p2), %s1086_s8, 128  }
 0x66c   : > { %1781 = vsyncadd (!%p1448_p2), %s1086_s8, 4294967168  ;;  %p27_p3 = scmp.ge.s32.totalorder %s2042_s16, 4   ;;  %s2291_s17 = smov %s1788_s18 }
 0x66d   : > { %s2292_s18 = smov %s1792_s19  ;;  %s2293_s19 = smov %s2054_s10 }
 0x66e   : > { %s2294_s20 = smov %s2042_s16  ;;  %29 = sbr.rel (!%p27_p3) target bundleno = 13 (0xd), region = 129 }
 0x675   :  { %1091 = vsyncpa [#allocation3], 1 }
 0x676   :  { %1093 = vsyncpa [#allocation3 + $0x1], 1 }
 0x677   :  { %1094 = vsyncpa [#allocation6], 1 }
 0x678   :  { %1095 = vsyncpa [#allocation9], 1 }
 0x679   :  { %1096 = vsyncpa [#allocation12], 1 }
 0x67a   :  { %1097 = vsyncpa [#allocation4], 1 }
 0x67b   :  { %1099 = vsyncpa [#allocation4 + $0x1], 1 }

// kernel: tpu_custom_call.1
= control target key start
LH: loop header
LB: loop body
LE: loop exit
PB: predicated region body
PF: predicated region fallthrough
CT: control target
= control target key end

     0   :  { %s2249_s0 = inlined_call_operand.hbm [shape: bf16[16,128], index: 0, kind: input, shape index: {}]   ;;  %s2250_s1 = inlined_call_operand.hbm [shape: bf16[128,128], index: 1, kind: input, shape index: {}]   ;;  %s2251_s2 = inlined_call_operand.vmem [shape: f32[1,128], index: 2, kind: input, shape index: {}]   ;;  %s2252_s3 = inlined_call_operand.hbm [shape: bf16[128,128], index: 3, kind: input, shape index: {}]   ;;  %s2253_s4 = inlined_call_operand.vmem [shape: f32[1,128], index: 4, kind: input, shape index: {}]   ;;  %s2254_s5 = inlined_call_operand.hbm [shape: bf16[128,128], index: 5, kind: input, shape index: {}]   ;;  %s2255_s6 = inlined_call_operand.vmem [shape: f32[1,128], index: 6, kind: input, shape index: {}]   ;;  %s2256_s7 = inlined_call_operand.hbm [shape: bf16[128,128], index: 7, kind: input, shape index: {}]   ;;  %s2257_s8 = inlined_call_operand.vmem [shape: f32[1,128], index: 8, kind: input, shape index: {}]   ;;  %s2258_s9 = inlined_call_operand.hbm [shape: bf16[128,128], index: 9, kind: input, shape index: {}]   ;;  %s2259_s10 = inlined_call_operand.vmem [shape: f32[1,128], index: 10, kind: input, shape index: {}]   ;;  %s2260_s11 = inlined_call_operand.hbm [shape: f32[16,128], index: 11, kind: output, shape index: {}]  }
   0x1   :  { %2265 = sst [smem:[#allocation19_spill]] %s2250_s1 }
   0x2   :  { %2266 = sst [smem:[#allocation20_spill]] %s2257_s8 }
   0x3   :  { %2267 = sst [smem:[#allocation21_spill]] %s2259_s10 }
   0x4   :  { %2268 = sst [smem:[#allocation22_spill]] %s2260_s11 }
   0x5   :  { %16 = vsyncpa [#allocation3], 0 }
   0x6   :  { %18 = vsyncpa [#allocation3 + $0x1], 0 }
   0x7   :  { %19 = vsyncpa [#allocation6], 0 }
   0x8   :  { %20 = vsyncpa [#allocation9], 0 }
   0x9   :  { %21 = vsyncpa [#allocation12], 0 }
   0xa   :  { %22 = vsyncpa [#allocation4], 0 }
   0xb   :  { %24 = vsyncpa [#allocation4 + $0x1], 0  ;;  %s1869_s17 = smov 0   ;;  %s1871_s18 = smov 0  }
   0xc   :  { %s1873_s19 = smov 0   ;;  %s1875_s20 = smov 0  }
   0xd LB: > { %s1798_s21 = smov [#allocation5]   ;;  %s1890_s23 = sadd.s32 4294967295, %s1796_s20   ;;  %s1796_s20 = sphi %s1875_s20, %s2294_s20   ;;  %s1792_s19 = sphi %s1873_s19, %s2293_s19   ;;  %s1788_s18 = sphi %s1871_s18, %s2292_s18   ;;  %s1784_s17 = sphi %s1869_s17, %s2291_s17  }
   0xe   : > { %s309_s22 = sshll.u32 %s1798_s21, 4  ;;  %p1192_p0 = scmp.ge.s32.totalorder %s1796_s20, 1  ;;  %s1895_s22 = int_to_ptr.vmem [resolvable:$true] %s309_s22 }
   0xf   : > { %p2262_p1 = scmp.eq.s32.totalorder %s1890_s23, 0  ;;  %p297_p2 = scmp.lt.s32.totalorder %s1796_s20, 3 }
  0x10   : > { %s1799_s25 = smov [#allocation8]   ;;  %s1800_s28 = smov [#allocation7]  }
  0x11   : > { %p1897_p3 = pnand %p1192_p0, %p297_p2  ;;  %s341_s26 = sshll.u32 %s1799_s25, 4  ;;  %s1910_s26 = int_to_ptr.vmem [resolvable:$true] %s341_s26 }
  0x12   : > { %s325_s29 = sshll.u32 %s1800_s28, 4  ;;  %s2271_s1 = sld [smem:[#allocation19_spill]]  ;;  %s1912_s29 = int_to_ptr.vmem [resolvable:$true] %s325_s29 }
  0x13   : > { %s2269_s24 = scalar_select %p1897_p3, 1, 0 }
  0x14   : > { %p1427_p5 = pneg %p1897_p3 }
  0x16   : > { %p1906_p6 = pnand %p1427_p5, %p2262_p1 }
  0x18   : > { %s1548_s13 = scalar_lea.hbm %s2271_s1, 1024  ;;  %p1922_p8 = pneg %p1906_p6 }
  0x19   : > { %p1549_p7 = scmp.ne.s32.totalorder %s2271_s1, %s1548_s13  ;;  %p1555_p11 = scmp.lt.u32.totalorder %s1548_s13, %s2271_s1 }
  0x1b   : > { %p1551_p9 = pnand %p1922_p8, %p1549_p7 }
  0x1d   : > { %p1552_p10 = pneg %p1551_p9 }
  0x1f   : > { %p1557_p12 = pnand %p1555_p11, %p1552_p10 }
  0x21   : > { %1560 = shalt.err (!%p1557_p12)
}
  0x22   : > { %s1561_s28 = scalar_lea.vmem %s1895_s22, 1024  ;;  %p1569_p5 = scmp.lt.s32.totalorder %s1895_s22, %s1895_s22 }
  0x23   : > { %p1562_p13 = scmp.ne.s32.totalorder %s1895_s22, %s1561_s28  ;;  %p1570_p4 = scmp.lt.s32.totalorder %s1561_s28, %s1561_s28 }
  0x25   : > { %p1564_p0 = pnand %p1562_p13, %p1922_p8  ;;  %p1571_p7 = por %p1570_p4, %p1569_p5 }
  0x27   : > { %p1565_p2 = pneg %p1564_p0 }
  0x29   : > { %p1572_p9 = pnand %p1571_p7, %p1565_p2 }
  0x2b   : > { %1575 = shalt.err (!%p1572_p9)
}
  0x2c   : > { %s1801_s30 = smov 64   ;;  %s1802_s12 = smov 4  }
  0x2d   : > { %1430 = dma.hbm_to_vmem [thread:$0]  (!%p1906_p6), %s2271_s1, 1024, %s1895_s22, [#allocation6], %s1801_s30, %s1801_s30, %s1802_s12  }
  0x2e   : > { %s1576_s25 = scalar_lea.hbm %s2254_s5, 1024 }
  0x2f   : > { %p1577_p4 = scmp.ne.s32.totalorder %s2254_s5, %s1576_s25  ;;  %p1583_p12 = scmp.lt.u32.totalorder %s1576_s25, %s2254_s5 }
  0x31   : > { %p1579_p10 = pnand %p1577_p4, %p1922_p8 }
  0x33   : > { %p1580_p11 = pneg %p1579_p10 }
  0x35   : > { %p1585_p13 = pnand %p1583_p12, %p1580_p11 }
  0x37   : > { %1588 = shalt.err (!%p1585_p13)
}
  0x38   : > { %s1589_s22 = scalar_lea.vmem %s1910_s26, 1024  ;;  %p1597_p7 = scmp.lt.s32.totalorder %s1910_s26, %s1910_s26 }
  0x39   : > { %p1590_p0 = scmp.ne.s32.totalorder %s1910_s26, %s1589_s22  ;;  %p1598_p9 = scmp.lt.s32.totalorder %s1589_s22, %s1589_s22 }
  0x3b   : > { %p1592_p2 = pnand %p1590_p0, %p1922_p8  ;;  %p1599_p4 = por %p1598_p9, %p1597_p7 }
  0x3d   : > { %p1593_p5 = pneg %p1592_p2 }
  0x3f   : > { %p1600_p10 = pnand %p1599_p4, %p1593_p5 }
  0x41   : > { %1603 = shalt.err (!%p1600_p10)
}
  0x42   : > { %1436 = dma.hbm_to_vmem [thread:$0]  (!%p1906_p6), %s2254_s5, 1024, %s1910_s26, [#allocation9], %s1801_s30, %s1801_s30, %s1802_s12  }
  0x43   : > { %s1604_s14 = scalar_lea.hbm %s2252_s3, 1024 }
  0x44   : > { %p1605_p11 = scmp.ne.s32.totalorder %s2252_s3, %s1604_s14  ;;  %p1611_p0 = scmp.lt.u32.totalorder %s1604_s14, %s2252_s3 }
  0x46   : > { %p1607_p12 = pnand %p1605_p11, %p1922_p8 }
  0x48   : > { %p1608_p13 = pneg %p1607_p12 }
  0x4a   : > { %p1613_p2 = pnand %p1611_p0, %p1608_p13 }
  0x4c   : > { %1616 = shalt.err (!%p1613_p2)
}
  0x4d   : > { %s1617_s26 = scalar_lea.vmem %s1912_s29, 1024  ;;  %p1625_p4 = scmp.lt.s32.totalorder %s1912_s29, %s1912_s29 }
  0x4e   : > { %p1618_p5 = scmp.ne.s32.totalorder %s1912_s29, %s1617_s26  ;;  %p1626_p10 = scmp.lt.s32.totalorder %s1617_s26, %s1617_s26 }
  0x50   : > { %p1620_p7 = pnand %p1618_p5, %p1922_p8  ;;  %p1627_p11 = por %p1626_p10, %p1625_p4 }
  0x52   : > { %p1621_p9 = pneg %p1620_p7 }
  0x54   : > { %p1628_p12 = pnand %p1627_p11, %p1621_p9 }
  0x56   : > { %1631 = shalt.err (!%p1628_p12)
}
  0x57   : > { %1433 = dma.hbm_to_vmem [thread:$0]  (!%p1906_p6), %s2252_s3, 1024, %s1912_s29, [#allocation6], %s1801_s30, %s1801_s30, %s1802_s12  }
  0x58   : > { %s1803_s10 = smov [#allocation10]   ;;  %s1804_s13 = smov [#allocation11]  }
  0x59   : > { %s357_s11 = sshll.u32 %s1803_s10, 4  ;;  %s373_s14 = sshll.u32 %s1804_s13, 4  ;;  %s358_s11 = int_to_ptr.vmem [resolvable:$true] %s357_s11  ;;  %s374_s14 = int_to_ptr.vmem [resolvable:$true] %s373_s14 }
  0x5a   : > { %s1632_s25 = scalar_lea.hbm %s2256_s7, 1024 }
  0x5b   : > { %p1633_p13 = scmp.ne.s32.totalorder %s2256_s7, %s1632_s25  ;;  %p1639_p5 = scmp.lt.u32.totalorder %s1632_s25, %s2256_s7 }
  0x5d   : > { %p1635_p0 = pnand %p1633_p13, %p1922_p8 }
  0x5f   : > { %p1636_p2 = pneg %p1635_p0 }
  0x61   : > { %p1641_p7 = pnand %p1639_p5, %p1636_p2 }
  0x63   : > { %1644 = shalt.err (!%p1641_p7)
}
  0x64   : > { %s1645_s29 = scalar_lea.vmem %s358_s11, 1024  ;;  %p1653_p11 = scmp.lt.s32.totalorder %s358_s11, %s358_s11 }
  0x65   : > { %p1646_p9 = scmp.ne.s32.totalorder %s358_s11, %s1645_s29  ;;  %p1654_p12 = scmp.lt.s32.totalorder %s1645_s29, %s1645_s29 }
  0x67   : > { %p1648_p4 = pnand %p1646_p9, %p1922_p8  ;;  %p1655_p1 = por %p1654_p12, %p1653_p11 }
  0x69   : > { %p1649_p10 = pneg %p1648_p4 }
  0x6b   : > { %p1656_p3 = pnand %p1655_p1, %p1649_p10 }
  0x6d   : > { %1659 = shalt.err (!%p1656_p3)
}
  0x6e   : > { %1439 = dma.hbm_to_vmem [thread:$0]  (!%p1906_p6), %s2256_s7, 1024, %s358_s11, [#allocation9], %s1801_s30, %s1801_s30, %s1802_s12  }
  0x6f   : > { %s1660_s15 = scalar_lea.hbm %s2258_s9, 1024 }
  0x70   : > { %p1661_p1 = scmp.ne.s32.totalorder %s2258_s9, %s1660_s15  ;;  %p1667_p0 = scmp.lt.u32.totalorder %s1660_s15, %s2258_s9 }
  0x72   : > { %p1663_p3 = pnand %p1661_p1, %p1922_p8 }
  0x74   : > { %p1664_p13 = pneg %p1663_p3 }
  0x76   : > { %p1669_p2 = pnand %p1667_p0, %p1664_p13 }
  0x78   : > { %1672 = shalt.err (!%p1669_p2)
}
  0x79   : > { %s1673_s22 = scalar_lea.vmem %s374_s14, 1024  ;;  %p1681_p4 = scmp.lt.s32.totalorder %s374_s14, %s374_s14 }
  0x7a   : > { %p1674_p5 = scmp.ne.s32.totalorder %s374_s14, %s1673_s22  ;;  %p1682_p10 = scmp.lt.s32.totalorder %s1673_s22, %s1673_s22 }
  0x7c   : > { %p1676_p7 = pnand %p1674_p5, %p1922_p8  ;;  %p1683_p11 = por %p1682_p10, %p1681_p4 }
  0x7e   : > { %p1677_p9 = pneg %p1676_p7 }
  0x80   : > { %p1684_p12 = pnand %p1683_p11, %p1677_p9 }
  0x82   : > { %1687 = shalt.err (!%p1684_p12)
}
  0x83   : > { %1442 = dma.hbm_to_vmem [thread:$0]  (!%p1906_p6), %s2258_s9, 1024, %s374_s14, [#allocation12], %s1801_s30, %s1801_s30, %s1802_s12  }
  0x84   : > { %s1191_s27 = sadd.s32 4294967294, %s1796_s20   ;;  %s2042_s16 = sadd.s32 1, %s1796_s20  }
  0x85   : > { %s37_s1 = sadd.s32 1, %s1792_s19  ;;  %s34_s8 = ssub.s32 %s1796_s20, %s2042_s16 }
  0x86   : > { %p44_p8 = scmp.ne.s32.totalorder %s1792_s19, %s1788_s18  ;;  %p35_p1 = scmp.eq.s32.totalorder %s34_s8, 0 }
  0x87   : > { %p45_p3 = scmp.eq.s32.totalorder %s1796_s20, 0  ;;  %p50_p13 = scmp.ne.s32.totalorder %s1788_s18, %s1784_s17 }
  0x88   : > { %p284_p0 = scmp.eq.s32.totalorder %s1890_s23, 1  ;;  %p2273_p5 = scmp.eq.s32.totalorder %s1890_s23, 0 }
  0x89   : > { %s2054_s10 = scalar_select %p35_p1, %s1792_s19, %s37_s1  }
  0x8a   : > { %p46_p2 = por %p45_p3, %p44_p8  ;;  %p2058_p7 = por %p2273_p5, %p50_p13 }
  0x8b   : > { %p2062_p6 = por %p284_p0, %p44_p8  ;;  %p290_p9 = scmp.eq.s32.totalorder %s1191_s27, 1 }
  0x8c   : > { %p1456_p4 = scmp.lt.s32.totalorder %s1796_s20, 2  ;;  %s390_s12 = sand.u32 1, %s1792_s19  }
  0x8d   : > { %s2275_s30 = scalar_select %p2062_p6, 1, 0 }
  0x8e   : > { %p2068_p10 = por %p290_p9, %p50_p13  ;;  %s1199_s15 = sshll.u32 %s390_s12, 2 }
  0x8f   : > { %s1200_s21 = sshll.u32 %s1796_s20, 6  ;;  %s394_s22 = scalar_lea.vmem [#allocation2], %s1199_s15 }
  0x90   : > { %s2276_s14 = scalar_select %p2068_p10, 1, 0 }
  0x91   : > { %s2076_s26 = scalar_lea.hbm %s2249_s0, %s1200_s21  ;;  %s401_s11 = sshll.u32 %s394_s22, 4  ;;  %s2082_s11 = int_to_ptr.vmem [resolvable:$true] %s401_s11 }
  0x92   : > { %p2078_p11 = pnand %p1456_p4, %p46_p2  ;;  %s391_s27 = scalar_lea.sflag [#allocation3], %s390_s12 }
  0x93   : > { %s1688_s1 = scalar_lea.hbm %s2076_s26, 64  ;;  %s1693_s21 = scalar_lea.hbm %s2249_s0, 128 }
  0x94   : > { %p1689_p12 = scmp.ne.s32.totalorder %s2076_s26, %s1688_s1  ;;  %p1690_p8 = pneg %p2078_p11 }
  0x95   : > { %p1694_p13 = scmp.lt.u32.totalorder %s2076_s26, %s2249_s0  ;;  %p1695_p0 = scmp.lt.u32.totalorder %s1693_s21, %s1688_s1 }
  0x96   : > { %p1691_p1 = pnand %p1690_p8, %p1689_p12  ;;  %p1697_p5 = scmp.lt.u32.totalorder %s1688_s1, %s2076_s26 }
  0x97   : > { %p1696_p2 = por %p1695_p0, %p1694_p13 }
  0x98   : > { %p1692_p3 = pneg %p1691_p1 }
  0x99   : > { %p1698_p9 = por %p1697_p5, %p1696_p2 }
  0x9b   : > { %p1699_p4 = pnand %p1698_p9, %p1692_p3 }
  0x9d   : > { %1702 = shalt.err (!%p1699_p4)
}
  0x9e   : > { %s1703_s12 = scalar_lea.vmem %s2082_s11, 64  ;;  %s1805_s22 = smov [#allocation2]  }
  0x9f   : > { %p1704_p12 = scmp.ne.s32.totalorder %s2082_s11, %s1703_s12  ;;  %s1708_s8 = sshll.u32 %s1805_s22, 4  ;;  %s1709_s8 = int_to_ptr.vmem [resolvable:$false] %s1708_s8 }
  0xa0   : > { %s1710_s15 = scalar_lea.vmem %s1709_s8, 128  ;;  %p1711_p6 = scmp.lt.s32.totalorder %s2082_s11, %s1709_s8 }
  0xa1   : > { %p1706_p1 = pnand %p1704_p12, %p1690_p8  ;;  %p1712_p13 = scmp.lt.s32.totalorder %s1710_s15, %s1703_s12 }
  0xa3   : > { %p1707_p10 = pneg %p1706_p1  ;;  %p1713_p0 = por %p1712_p13, %p1711_p6 }
  0xa5   : > { %p1714_p2 = pnand %p1713_p0, %p1707_p10 }
  0xa7   : > { %1717 = shalt.err (!%p1714_p2)
}
  0xa8   : > { %1446 = dma.hbm_to_vmem [thread:$0]  (!%p2078_p11), %s2076_s26, 64, %s2082_s11, %s391_s27  }
  0xa9   : > { %p2278_p3 = scmp.ne.s32.totalorder %s2269_s24, 0 }
  0xaa   : > { %s2112_s1 = sand.u32 (!%p2278_p3), 1, %s1788_s18  }
  0xab   : > { %410 = sbr.rel (%p2278_p3) target bundleno = 1638 (0x666), region = 64  ;;  %s1202_s21 = sshll.u32 (!%p2278_p3), %s2112_s1, 2 }
  0xac   : > { %s413_s25 = scalar_lea.sflag (!%p2278_p3), [#allocation3], %s2112_s1  ;;  %s2116_s28 = scalar_lea.vmem (!%p2278_p3), [#allocation2], %s1202_s21 }
  0xb2   : > { %1763 = dma.done.wait (%p2058_p7), %s413_s25, 64  }
  0xb3   : > { %1765 = vsyncadd (%p2058_p7), %s413_s25, 4294967232  ;;  %p2279_p6 = scmp.eq.s32.totalorder %s1890_s23, 0 }
  0xb5   : > { %1767 = dma.done.wait (%p2279_p6), [#allocation6], 2048   ;;  %p2280_p10 = pmov %p2279_p6 }
  0xb6   : > { %p2281_p11 = pmov %p2279_p6 }
  0xb7   : > { %1769 = vsyncadd (%p2280_p10), [#allocation6], 4294965248 }
  0xb8   : > { %1771 = dma.done.wait (%p2281_p11), [#allocation9], 2048   ;;  %p2282_p8 = pmov %p2279_p6 }
  0xb9   : > { %p2283_p5 = pmov %p2279_p6 }
  0xba   : > { %1773 = vsyncadd (%p2282_p8), [#allocation9], 4294965248 }
  0xbb   : > { %1775 = dma.done.wait (%p2283_p5), [#allocation12], 1024   ;;  %p2284_p9 = pmov %p2283_p5 }
  0xbc   : > { %v1806_v0 = vmov 0.0   ;;  %vm1807_vm0 = vmmov 0   ;;  %v1504_v1 = vld [vmem:[#allocation5] sm:$0xff]   ;;  %v1505_v2 = vld [vmem:[#allocation5 + $0x8] sm:$0xff]   ;;  %v1506_v3 = vld [vmem:[#allocation5 + $0x10] sm:$0xff]   ;;  %s2285_s8 = sld [smem:[#allocation20_spill]] }
  0xbd   : > { %1777 = vsyncadd (%p2284_p9), [#allocation12], 4294966272  ;;  %1303 = vmatprep.subr.bf16.mxu0 %v1806_v0  ;;  %1319 = vmatprep.mubr.msk.bf16.mxu0 %vm1807_vm0, %v1806_v0  ;;  %v1512_v4 = vld [vmem:[#allocation7] sm:$0xff]   ;;  %v1507_v5 = vld [vmem:[#allocation5 + $0x18] sm:$0xff]   ;;  %s2286_s25 = sld [smem:[#allocation21_spill]]  ;;  %s1255_s24 = sshll.u32 %s1890_s23, 7 }
  0xbe   : > { %1323 = vmatprep.subr.bf16.mxu1 %v1806_v0  ;;  %1339 = vmatprep.mubr.msk.bf16.mxu1 %vm1807_vm0, %v1806_v0  ;;  %v1513_v6 = vld [vmem:[#allocation7 + $0x8] sm:$0xff]   ;;  %v1508_v7 = vld [vmem:[#allocation5 + $0x20] sm:$0xff]   ;;  %v1514_v8 = vld [vmem:[#allocation7 + $0x10] sm:$0xff]   ;;  %s2287_s27 = sld [smem:[#allocation22_spill]]  ;;  %s1060_s22 = scalar_lea.sflag [#allocation4], %s2112_s1 }
  0xbf   : > { %1304 = vmatpush3.bf16.msra.mxu0 %v1504_v1  ;;  %1324 = vmatpush3.bf16.msra.mxu1 %v1512_v4  ;;  %v1509_v9 = vld [vmem:[#allocation5 + $0x28] sm:$0xff]   ;;  %v1515_v10 = vld [vmem:[#allocation7 + $0x18] sm:$0xff]   ;;  %v1510_v11 = vld [vmem:[#allocation5 + $0x30] sm:$0xff]   ;;  %p2288_p4 = scmp.ne.s32.totalorder %s2275_s30, 0  ;;  %s1808_s23 = smov [#allocation13]  }
  0xc0   : > { %1305 = vmatprep.subr.bf16.mxu0 %v1806_v0  ;;  %1325 = vmatprep.subr.bf16.mxu1 %v1806_v0  ;;  %v1516_v12 = vld [vmem:[#allocation7 + $0x20] sm:$0xff]   ;;  %v1511_v13 = vld [vmem:[#allocation5 + $0x38] sm:$0xff]   ;;  %v1517_v14 = vld [vmem:[#allocation7 + $0x28] sm:$0xff]   ;;  %s1722_s15 = sshll.u32 %s1808_s23, 4  ;;  %s1723_s15 = int_to_ptr.vmem [resolvable:$false] %s1722_s15 }
  0xc1   : > { %v476_v15 = vld [vmem:[%s2116_s28] sm:$0xf]  ;;  %v1518_v16 = vld [vmem:[#allocation7 + $0x30] sm:$0xff]   ;;  %v1520_v18 = vld [vmem:[#allocation8] sm:$0xff]   ;;  %s1208_s28 = sshll.u32 %s2112_s1, 3  ;;  %s1724_s21 = scalar_lea.vmem %s1723_s15, 256 }
  0xc2   : > { %v1519_v17 = vld [vmem:[#allocation7 + $0x38] sm:$0xff]   ;;  %v1521_v19 = vld [vmem:[#allocation8 + $0x8] sm:$0xff]   ;;  %v1522_v20 = vld [vmem:[#allocation8 + $0x10] sm:$0xff]   ;;  %s474_s13 = scalar_lea.vmem [#allocation13], %s1208_s28 }
  0xc3   : > { %1306 = vmatpush3.bf16.msra.mxu0 %v1505_v2  ;;  %1326 = vmatpush3.bf16.msra.mxu1 %v1513_v6  ;;  %v1523_v21 = vld [vmem:[#allocation8 + $0x18] sm:$0xff]   ;;  %v1524_v22 = vld [vmem:[#allocation8 + $0x20] sm:$0xff]   ;;  %v1525_v23 = vld [vmem:[#allocation8 + $0x28] sm:$0xff]   ;;  %s1073_s26 = sshll.u32 %s474_s13, 4  ;;  %s2207_s26 = int_to_ptr.vmem [resolvable:$true] %s1073_s26 }
  0xc4   : > { %1307 = vmatprep.subr.bf16.mxu0 %v1806_v0  ;;  %1327 = vmatprep.subr.bf16.mxu1 %v1806_v0  ;;  %v1209_v24 = vld [vmem:[%s2251_s2] ss:$0 sm:$0xff]  ;;  %v1526_v33 = vld [vmem:[#allocation8 + $0x30] sm:$0xff]   ;;  %v1528_v35 = vld [vmem:[#allocation10] sm:$0xff]   ;;  %s2205_s12 = scalar_lea.hbm %s2287_s27, %s1255_s24  ;;  %p1725_p13 = scmp.lt.s32.totalorder %s2207_s26, %s1723_s15 }
  0xc5   : > { %v1527_v34 = vld [vmem:[#allocation8 + $0x38] sm:$0xff]   ;;  %v1529_v36 = vld [vmem:[#allocation10 + $0x8] sm:$0xff]   ;;  %v1530_v37 = vld [vmem:[#allocation10 + $0x10] sm:$0xff]  }
  0xc6   : > { %v1531_v38 = vld [vmem:[#allocation10 + $0x18] sm:$0xff]   ;;  %v1532_v39 = vld [vmem:[#allocation10 + $0x20] sm:$0xff]   ;;  %v1533_v40 = vld [vmem:[#allocation10 + $0x28] sm:$0xff]  }
  0xc7   : > { %1308 = vmatpush3.bf16.msra.mxu0 %v1506_v3  ;;  %1328 = vmatpush3.bf16.msra.mxu1 %v1514_v8  ;;  %v1218_v41 = vld [vmem:[%s2253_s4] ss:$0 sm:$0xff]  ;;  %v1534_v50 = vld [vmem:[#allocation10 + $0x30] sm:$0xff]   ;;  %v1536_v52 = vld [vmem:[#allocation11] sm:$0xff]  }
  0xc8   : > { %1309 = vmatprep.subr.bf16.mxu0 %v1806_v0  ;;  %1329 = vmatprep.subr.bf16.mxu1 %v1806_v0  ;;  %v1535_v51 = vld [vmem:[#allocation10 + $0x38] sm:$0xff]   ;;  %v1537_v53 = vld [vmem:[#allocation11 + $0x8] sm:$0xff]   ;;  %v1538_v54 = vld [vmem:[#allocation11 + $0x10] sm:$0xff]  }
  0xc9   : > { %v1539_v55 = vld [vmem:[#allocation11 + $0x18] sm:$0xff]   ;;  %v1540_v56 = vld [vmem:[#allocation11 + $0x20] sm:$0xff]   ;;  %v1541_v57 = vld [vmem:[#allocation11 + $0x28] sm:$0xff]  }
  0xca   : > { %v1227_v58 = vld [vmem:[%s2255_s6] ss:$0 sm:$0xff]  ;;  %v1542_v4 = vld [vmem:[#allocation11 + $0x30] sm:$0xff]  }
  0xcb   : > { %1310 = vmatpush3.bf16.msra.mxu0 %v1507_v5  ;;  %1330 = vmatpush3.bf16.msra.mxu1 %v1515_v10  ;;  %v1543_v5 = vld [vmem:[#allocation11 + $0x38] sm:$0xff]  }
  0xcc   : > { %1311 = vmatprep.subr.bf16.mxu0 %v1806_v0  ;;  %1331 = vmatprep.subr.bf16.mxu1 %v1806_v0  ;;  %v1236_v6 = vld [vmem:[%s2285_s8] ss:$0 sm:$0xff]  ;;  %s1718_s8 = scalar_lea.vmem %s2207_s26, 128 }
  0xcd   : > { %p1719_p7 = scmp.ne.s32.totalorder %s2207_s26, %s1718_s8  ;;  %p1726_p0 = scmp.lt.s32.totalorder %s1724_s21, %s1718_s8 }
  0xcf   : > { %1312 = vmatpush3.bf16.msra.mxu0 %v1508_v7  ;;  %1332 = vmatpush3.bf16.msra.mxu1 %v1516_v12  ;;  %p1720_p12 = pnand %p1719_p7, %p2288_p4  ;;  %p1727_p2 = por %p1726_p0, %p1725_p13 }
  0xd0   : > { %1313 = vmatprep.subr.bf16.mxu0 %v1806_v0  ;;  %1333 = vmatprep.subr.bf16.mxu1 %v1806_v0 }
  0xd1   : > { %p1721_p1 = pneg %p1720_p12 }
  0xd3   : > { %1314 = vmatpush3.bf16.msra.mxu0 %v1509_v9  ;;  %1334 = vmatpush3.bf16.msra.mxu1 %v1517_v14  ;;  %p1728_p3 = pnand %p1727_p2, %p1721_p1 }
  0xd4   : > { %1315 = vmatprep.subr.bf16.mxu0 %v1806_v0  ;;  %1335 = vmatprep.subr.bf16.mxu1 %v1806_v0 }
  0xd7   : > { %1316 = vmatpush3.bf16.msra.mxu0 %v1510_v11  ;;  %1336 = vmatpush3.bf16.msra.mxu1 %v1518_v16 }
  0xd8   : > { %1317 = vmatprep.subr.bf16.mxu0 %v1806_v0  ;;  %1337 = vmatprep.subr.bf16.mxu1 %v1806_v0 }
  0xdb   : > { %1318 = vmatpush3.bf16.msra.mxu0 %v1511_v13  ;;  %1338 = vmatpush3.bf16.msra.mxu1 %v1519_v17 }
  0xdc   : > { %1343 = vmatprep.subr.bf16.mxu0 %v1806_v0  ;;  %1363 = vmatprep.subr.bf16.mxu1 %v1806_v0 }
  0xde   : > { %1320 = vmatmul.mubr.bf16.vlgmr.msra.gmra.mrb[0].mxu0 %v476_v15 }
  0xdf   : > { %1359 = vmatprep.mubr.msk.bf16.mxu0 %vm1807_vm0, %v1806_v0  ;;  %1344 = vmatpush3.bf16.msra.mxu0 %v1520_v18 }
  0xe0   : > { %1345 = vmatprep.subr.bf16.mxu0 %v1806_v0 }
  0xe3   : > { %1346 = vmatpush3.bf16.msra.mxu0 %v1521_v19 }
  0xe4   : > { %1347 = vmatprep.subr.bf16.mxu0 %v1806_v0 }
  0xe7   : > { %1348 = vmatpush3.bf16.msra.mxu0 %v1522_v20 }
  0xe8   : > { %1349 = vmatprep.subr.bf16.mxu0 %v1806_v0 }
  0xeb   : > { %1350 = vmatpush3.bf16.msra.mxu0 %v1523_v21 }
  0xec   : > { %1351 = vmatprep.subr.bf16.mxu0 %v1806_v0 }
  0xef   : > { %1352 = vmatpush3.bf16.msra.mxu0 %v1524_v22 }
  0xf0   : > { %1353 = vmatprep.subr.bf16.mxu0 %v1806_v0 }
  0xf3   : > { %1354 = vmatpush3.bf16.msra.mxu0 %v1525_v23 }
  0xf4   : > { %1355 = vmatprep.subr.bf16.mxu0 %v1806_v0 }
  0xf7   : > { %1356 = vmatpush3.bf16.msra.mxu0 %v1526_v33 }
  0xf8   : > { %1357 = vmatprep.subr.bf16.mxu0 %v1806_v0 }
  0xfb   : > { %1358 = vmatpush3.bf16.msra.mxu0 %v1527_v34 }
  0xfc   : > { %1383 = vmatprep.subr.bf16.mxu0 %v1806_v0 }
 0x1b1   : > { %v582_v25 = vpop.f32.mrb[0].mxu0 }
 0x1b2   : > { %v583_v26 = vadd.f32 %v1209_v24, %v582_v25  ;;  %v1321_v27 = vpop.f32.mrb[1].mxu0 }
 0x1b3   : > { %v585_v28 = vpop.f32.mrb[2].mxu0 }
 0x1b4   : > { %vm588_vm1 = vcmp.gt.f32.partialorder %v583_v26, 0.0  ;;  %v589_v29 = vmul.f32 0.2, %v583_v26  ;;  %v1322_v30 = vpop.f32.mrb[3].mxu0 }
 0x1b6   : > { %v590_v31 = vsel %vm588_vm1, %v583_v26, %v589_v29 }
 0x1b7   : > { %v591_v32 = vpack.c.bf16 %v590_v31, %v590_v31 }
 0x1b9   : > { %1340 = vmatmul.mubr.bf16.vlgmr.msra.gmra.mrb[0].mxu1 %v591_v32 }
 0x1ba   : > { %1379 = vmatprep.mubr.msk.bf16.mxu1 %vm1807_vm0, %v1806_v0  ;;  %1364 = vmatpush3.bf16.msra.mxu1 %v1528_v35 }
 0x1bb   : > { %1365 = vmatprep.subr.bf16.mxu1 %v1806_v0 }
 0x1be   : > { %1366 = vmatpush3.bf16.msra.mxu1 %v1529_v36 }
 0x1bf   : > { %1367 = vmatprep.subr.bf16.mxu1 %v1806_v0 }
 0x1c2   : > { %1368 = vmatpush3.bf16.msra.mxu1 %v1530_v37 }
 0x1c3   : > { %1369 = vmatprep.subr.bf16.mxu1 %v1806_v0 }
 0x1c6   : > { %1370 = vmatpush3.bf16.msra.mxu1 %v1531_v38 }
 0x1c7   : > { %1371 = vmatprep.subr.bf16.mxu1 %v1806_v0 }
 0x1ca   : > { %1372 = vmatpush3.bf16.msra.mxu1 %v1532_v39 }
 0x1cb   : > { %1373 = vmatprep.subr.bf16.mxu1 %v1806_v0 }
 0x1ce   : > { %1374 = vmatpush3.bf16.msra.mxu1 %v1533_v40 }
 0x1cf   : > { %1375 = vmatprep.subr.bf16.mxu1 %v1806_v0 }
 0x1d2   : > { %1376 = vmatpush3.bf16.msra.mxu1 %v1534_v50 }
 0x1d3   : > { %1377 = vmatprep.subr.bf16.mxu1 %v1806_v0 }
 0x1d6   : > { %1378 = vmatpush3.bf16.msra.mxu1 %v1535_v51 }
 0x28c   : > { %v697_v42 = vpop.f32.mrb[0].mxu1 }
 0x28d   : > { %v698_v43 = vadd.f32 %v1218_v41, %v697_v42  ;;  %v1341_v44 = vpop.f32.mrb[1].mxu1 }
 0x28e   : > { %v700_v45 = vpop.f32.mrb[2].mxu1 }
 0x28f   : > { %vm703_vm2 = vcmp.gt.f32.partialorder %v698_v43, 0.0  ;;  %v704_v46 = vmul.f32 0.2, %v698_v43  ;;  %v1342_v47 = vpop.f32.mrb[3].mxu1 }
 0x291   : > { %v705_v48 = vsel %vm703_vm2, %v698_v43, %v704_v46 }
 0x292   : > { %v706_v49 = vpack.c.bf16 %v705_v48, %v705_v48 }
 0x294   : > { %1360 = vmatmul.mubr.bf16.vlgmr.msra.gmra.mrb[4].mxu0 %v706_v49 }
 0x295   : > { %1399 = vmatprep.mubr.msk.bf16.mxu0 %vm1807_vm0, %v1806_v0  ;;  %1384 = vmatpush3.bf16.msra.mxu0 %v1536_v52 }
 0x296   : > { %1385 = vmatprep.subr.bf16.mxu0 %v1806_v0 }
 0x299   : > { %1386 = vmatpush3.bf16.msra.mxu0 %v1537_v53 }
 0x29a   : > { %1387 = vmatprep.subr.bf16.mxu0 %v1806_v0 }
 0x29d   : > { %1388 = vmatpush3.bf16.msra.mxu0 %v1538_v54 }
 0x29e   : > { %1389 = vmatprep.subr.bf16.mxu0 %v1806_v0 }
 0x2a1   : > { %1390 = vmatpush3.bf16.msra.mxu0 %v1539_v55 }
 0x2a2   : > { %1391 = vmatprep.subr.bf16.mxu0 %v1806_v0 }
 0x2a5   : > { %1392 = vmatpush3.bf16.msra.mxu0 %v1540_v56 }
 0x2a6   : > { %1393 = vmatprep.subr.bf16.mxu0 %v1806_v0 }
 0x2a9   : > { %1394 = vmatpush3.bf16.msra.mxu0 %v1541_v57 }
 0x2aa   : > { %1395 = vmatprep.subr.bf16.mxu0 %v1806_v0 }
 0x2ad   : > { %1396 = vmatpush3.bf16.msra.mxu0 %v1542_v4 }
 0x2ae   : > { %1397 = vmatprep.subr.bf16.mxu0 %v1806_v0  ;;  %v1245_v0 = vld [vmem:[%s2286_s25] ss:$0 sm:$0xff] }
 0x2b1   : > { %1398 = vmatpush3.bf16.msra.mxu0 %v1543_v5 }
 0x367   : > { %v812_v59 = vpop.f32.mrb[4].mxu0 }
 0x368   : > { %v813_v60 = vadd.f32 %v1227_v58, %v812_v59  ;;  %v1361_v61 = vpop.f32.mrb[5].mxu0 }
 0x369   : > { %v815_v62 = vpop.f32.mrb[6].mxu0 }
 0x36a   : > { %vm818_vm3 = vcmp.gt.f32.partialorder %v813_v60, 0.0  ;;  %v819_v63 = vmul.f32 0.2, %v813_v60  ;;  %v1362_v1 = vpop.f32.mrb[7].mxu0 }
 0x36c   : > { %v820_v2 = vsel %vm818_vm3, %v813_v60, %v819_v63 }
 0x36d   : > { %v821_v3 = vpack.c.bf16 %v820_v2, %v820_v2 }
 0x36f   : > { %1380 = vmatmul.mubr.bf16.vlgmr.msra.gmra.mrb[4].mxu1 %v821_v3 }
 0x442   : > { %v927_v7 = vpop.f32.mrb[4].mxu1 }
 0x443   : > { %v928_v8 = vadd.f32 %v1236_v6, %v927_v7  ;;  %v1381_v9 = vpop.f32.mrb[5].mxu1 }
 0x444   : > { %v930_v10 = vpop.f32.mrb[6].mxu1 }
 0x445   : > { %vm933_vm4 = vcmp.gt.f32.partialorder %v928_v8, 0.0  ;;  %v934_v11 = vmul.f32 0.2, %v928_v8  ;;  %v1382_v12 = vpop.f32.mrb[7].mxu1 }
 0x447   : > { %v935_v13 = vsel %vm933_vm4, %v928_v8, %v934_v11 }
 0x448   : > { %v936_v14 = vpack.c.bf16 %v935_v13, %v935_v13 }
 0x44a   : > { %1400 = vmatmul.mubr.bf16.vlgmr.msra.gmra.mrb[8].mxu0 %v936_v14 }
 0x51d   : > { %v1042_v15 = vpop.f32.mrb[8].mxu0 }
 0x51e   : > { %v1043_v16 = vadd.f32 %v1245_v0, %v1042_v15  ;;  %v1401_v17 = vpop.f32.mrb[9].mxu0 }
 0x51f   : > { %v1045_v18 = vpop.f32.mrb[10].mxu0 }
 0x520   : > { %1048 = vmax.xlane.f32.xlu0 %v1043_v16  ;;  %v1402_v19 = vpop.f32.mrb[11].mxu0 }
 0x5ad   : > { %v1049_v20 = vpop.xlane.xlu0 %1048 }
 0x5ae   : > { %v1050_v21 = vsub.f32 %v1043_v16, %v1049_v20 }
 0x5b0   : > { %v1051_v22 = vmul.f32 1.442695, %v1050_v21 }
 0x5b2   : > { %1544 = vpow2.f32 %v1051_v22 }
 0x5bc   : > { %v1545_v23 = vpop.eup %1544 }
 0x5bd   : > { %1053 = vadd.xlane.f32.xlu0 %v1545_v23 }
 0x64a   : > { %v1054_v24 = vpop.xlane.xlu0 %1053 }
 0x64b   : > { %1546 = vrcp.f32 %v1054_v24 }
 0x655   : > { %v1547_v25 = vpop.eup %1546 }
 0x656   : > { %v1057_v26 = vmul.f32 %v1547_v25, %v1545_v23 }
 0x658   : > { %1058 = vst [vmem:[%s474_s13] sm:$0xff] %v1057_v26 }
 0x659   : > { %1731 = shalt.err (!%p1728_p3)
}
 0x65a   : > { %s1732_s1 = scalar_lea.hbm %s2205_s12, 128  ;;  %s1736_s24 = scalar_lea.hbm %s2287_s27, 256 }
 0x65b   : > { %p1733_p6 = scmp.ne.s32.totalorder %s2205_s12, %s1732_s1  ;;  %p1737_p8 = scmp.lt.u32.totalorder %s2205_s12, %s2287_s27 }
 0x65c   : > { %p1738_p5 = scmp.lt.u32.totalorder %s1736_s24, %s1732_s1  ;;  %p1740_p7 = scmp.lt.u32.totalorder %s1732_s1, %s2205_s12 }
 0x65d   : > { %p1734_p10 = pnand %p1733_p6, %p2288_p4 }
 0x65e   : > { %p1739_p9 = por %p1738_p5, %p1737_p8 }
 0x65f   : > { %p1735_p11 = pneg %p1734_p10 }
 0x660   : > { %p1741_p12 = por %p1740_p7, %p1739_p9 }
 0x662   : > { %p1742_p1 = pnand %p1741_p12, %p1735_p11 }
 0x664   : > { %1745 = shalt.err (!%p1742_p1)
}
 0x665   : > { %1425 = dma.vmem_to_hbm [thread:$0]  (%p2288_p4), %s2207_s26, 128, %s2205_s12, %s1060_s22  }
 0x666 PF: > { %s1085_s29 = sand.u32 1, %s1784_s17   ;;  %p2289_p13 = scmp.ne.s32.totalorder %s2276_s14, 0 }
 0x667   : > { %p2290_p0 = scmp.ge.s32.totalorder %s1796_s20, 2  ;;  %s1086_s8 = scalar_lea.sflag [#allocation4], %s1085_s29 }
 0x669   : > { %p1448_p2 = pnand %p2290_p0, %p2289_p13 }
 0x66b   : > { %1779 = dma.done.wait (!%p1448_p2), %s1086_s8, 128  }
 0x66c   : > { %1781 = vsyncadd (!%p1448_p2), %s1086_s8, 4294967168  ;;  %p27_p3 = scmp.ge.s32.totalorder %s2042_s16, 4   ;;  %s2291_s17 = smov %s1788_s18 }
 0x66d   : > { %s2292_s18 = smov %s1792_s19  ;;  %s2293_s19 = smov %s2054_s10 }
 0x66e   : > { %s2294_s20 = smov %s2042_s16  ;;  %29 = sbr.rel (!%p27_p3) target bundleno = 13 (0xd), region = 129 }
 0x675   :  { %1091 = vsyncpa [#allocation3], 1 }
 0x676   :  { %1093 = vsyncpa [#allocation3 + $0x1], 1 }
 0x677   :  { %1094 = vsyncpa [#allocation6], 1 }
 0x678   :  { %1095 = vsyncpa [#allocation9], 1 }
 0x679   :  { %1096 = vsyncpa [#allocation12], 1 }
 0x67a   :  { %1097 = vsyncpa [#allocation4], 1 }
 0x67b   :  { %1099 = vsyncpa [#allocation4 + $0x1], 1 }

</bundles_post_ra>
